<compile_context>
chip_gen: v7x
topology: tpu7x:2x2x1
jax: 0.10.0
libtpu: 0.0.40
codegen_flags: <defaults>
</compile_context>

<pallas_src>
import functools

import jax
import jax.numpy as jnp
from jax import lax
from jax.experimental import pallas as pl
from jax.experimental.pallas import tpu as pltpu


def _conv_rowtile_kernel(x_ref, w_ref, b_ref, o_ref, *, K, stride):
    """One (batch, row-tile) grid step of the convolution.

    x_ref: (1, H_pad, W_pad, C_in)   bf16 full padded image for this batch
                                     element (resident across the inner axis).
    w_ref: (K*K*C_in, C_out)         bf16 im2col weights.
    b_ref: (1, C_out)                f32 bias.
    o_ref: (1, tile_h, W_out, C_out) output row tile.
    """
    _, tile_h, W_out, C_out = o_ref.shape
    C_in = x_ref.shape[3]

    t = pl.program_id(1)
    row0 = t * (tile_h * stride)
    if (tile_h * stride) % 8 == 0:
        row0 = pl.multiple_of(row0, 8)

    h_span = (tile_h - 1) * stride + 1      # strided row extent of one tap
    w_span = (W_out - 1) * stride + 1       # strided col extent of one tap
    n_rows = h_span + K - 1                 # input rows needed by this tile

    # Load the rows this tile needs once; taps below are slices of it.
    xs = x_ref[0, pl.ds(row0, n_rows), :, :]           # (n_rows, W_pad, C_in)

    # im2col: K*K taps, each (tile_h*W_out, C_in); concatenated along the
    # contraction dim so the MXU sees ONE matmul with K = K*K*C_in.
    cols = []
    for kh in range(K):
        for kw in range(K):
            slab = lax.slice(
                xs,
                (kh, kw, 0),
                (kh + h_span, kw + w_span, C_in),
                (stride, stride, 1))                   # (tile_h, W_out, C_in)
            # merge leading dims only (last dim unchanged -> cheap/safe)
            cols.append(slab.reshape(tile_h * W_out, C_in))
    patch = jnp.concatenate(cols, axis=-1)             # (tile_h*W_out, K*K*C_in)

    acc = jnp.dot(patch, w_ref[...],
                  preferred_element_type=jnp.float32)  # (tile_h*W_out, C_out)
    acc = acc + b_ref[...]                             # f32 epilogue (v5e-safe)
    o_ref[0] = acc.reshape(tile_h, W_out, C_out).astype(o_ref.dtype)


def _pick_tile_h(H_out, W_out, target_pixels=256):
    """Largest divisor of H_out keeping tile_h * W_out around <= target."""
    tile_h = 1
    for cand in range(1, H_out + 1):
        if H_out % cand == 0 and cand * W_out <= max(target_pixels, W_out):
            tile_h = cand
    return tile_h


def upsample_conv_layer(x_nchw, weight_oihw, bias, *, kernel_size, stride,
                        upsample=None):
    """Forward pass of UpsampleConvLayer (PyTorch NCHW in / NCHW out)."""
    K = kernel_size

    # --- plain-JAX glue: layout, nearest upsample, reflection pad ------------
    x = jnp.transpose(x_nchw, (0, 2, 3, 1))                    # NHWC
    if upsample:
        x = jnp.repeat(x, upsample, axis=1)
        x = jnp.repeat(x, upsample, axis=2)
    pad = K // 2
    if pad > 0:
        x = jnp.pad(x, ((0, 0), (pad, pad), (pad, pad), (0, 0)), mode="reflect")
    # TODO(synk): fuse nearest-upsample/reflect-pad into the kernel's index
    # arithmetic to avoid materializing the upsampled intermediate in HBM.

    N, H_pad, W_pad, C_in = x.shape
    C_out = weight_oihw.shape[0]
    H_out = (H_pad - K) // stride + 1
    W_out = (W_pad - K) // stride + 1

    tile_h = _pick_tile_h(H_out, W_out)
    n_row_tiles = H_out // tile_h

    # bf16 MXU inputs (f32 accumulation in the kernel); halves activation DMA.
    x_b = x.astype(jnp.bfloat16)
    w2d = (jnp.transpose(weight_oihw, (2, 3, 1, 0))            # (K, K, C_in, C_out)
           .reshape(K * K * C_in, C_out)
           .astype(jnp.bfloat16))
    b2 = bias.reshape(1, C_out).astype(jnp.float32)

    kern = functools.partial(_conv_rowtile_kernel, K=K, stride=stride)

    out_nhwc = pl.pallas_call(
        kern,
        out_shape=jax.ShapeDtypeStruct((N, H_out, W_out, C_out), x_nchw.dtype),
        grid_spec=pltpu.PrefetchScalarGridSpec(
            num_scalar_prefetch=0,
            grid=(N, n_row_tiles),
            in_specs=[
                # Block index depends only on n: the padded image is fetched
                # once per batch element and reused across all row tiles.
                pl.BlockSpec((1, H_pad, W_pad, C_in), lambda n, t: (n, 0, 0, 0)),
                pl.BlockSpec((K * K * C_in, C_out), lambda n, t: (0, 0)),
                pl.BlockSpec((1, C_out), lambda n, t: (0, 0)),
            ],
            out_specs=pl.BlockSpec((1, tile_h, W_out, C_out),
                                   lambda n, t: (n, t, 0, 0)),
        ),
        compiler_params=pltpu.CompilerParams(
            dimension_semantics=("parallel", "parallel")),
    )(x_b, w2d, b2)

    return jnp.transpose(out_nhwc, (0, 3, 1, 2))               # back to NCHW


def _reference(x_nchw, weight_oihw, bias, *, kernel_size, stride, upsample):
    """Pure-JAX reference (lax conv, full f32) to verify the Pallas kernel."""
    x = jnp.transpose(x_nchw, (0, 2, 3, 1))
    if upsample:
        x = jnp.repeat(x, upsample, axis=1)
        x = jnp.repeat(x, upsample, axis=2)
    pad = kernel_size // 2
    if pad > 0:
        x = jnp.pad(x, ((0, 0), (pad, pad), (pad, pad), (0, 0)), mode="reflect")
    w_hwio = jnp.transpose(weight_oihw, (2, 3, 1, 0))
    out = lax.conv_general_dilated(
        x, w_hwio, window_strides=(stride, stride), padding="VALID",
        dimension_numbers=("NHWC", "HWIO", "NHWC"),
        precision=lax.Precision.HIGHEST)
    out = out + bias[None, None, None, :]
    return jnp.transpose(out, (0, 3, 1, 2))


if __name__ == "__main__":
    # UpsampleConvLayer(in_channels=4, out_channels=8, kernel_size=3, stride=1,
    #                   upsample=2)
    N, C_in, H, W = 2, 4, 16, 16
    C_out, K, stride, upsample = 8, 3, 1, 2

    key = jax.random.PRNGKey(0)
    kx, kw_, kb = jax.random.split(key, 3)
    x = jax.random.normal(kx, (N, C_in, H, W), dtype=jnp.float32)
    weight = 0.1 * jax.random.normal(kw_, (C_out, C_in, K, K), dtype=jnp.float32)
    bias = 0.1 * jax.random.normal(kb, (C_out,), dtype=jnp.float32)

    out = upsample_conv_layer(x, weight, bias, kernel_size=K, stride=stride,
                              upsample=upsample)
    out = jax.block_until_ready(out)

    # Reference computed from the same bf16-rounded activations/weights the
    # kernel feeds the MXU (f32 accumulation), so the comparison is tight.
    x_q = x.astype(jnp.bfloat16).astype(jnp.float32)
    w_q = weight.astype(jnp.bfloat16).astype(jnp.float32)
    ref = _reference(x_q, w_q, bias, kernel_size=K, stride=stride,
                     upsample=upsample)

    assert out.shape == (N, C_out, H * upsample, W * upsample), out.shape
    err = float(jnp.max(jnp.abs(out - ref)))
    assert jnp.allclose(out, ref, atol=1e-3, rtol=1e-3), f"mismatch, max err {err}"

    print("KERNEL_OK")
</pallas_src>

<mosaic_0001>
module attributes {stable_mosaic.version = 11 : i64} {
  func.func @_conv_rowtile_kernel(%arg0: i32, %arg1: i32, %arg2: memref<1x34x34x4xbf16, #tpu.memory_space<vmem>>, %arg3: memref<36x8xbf16, #tpu.memory_space<vmem>>, %arg4: memref<1x8xf32, #tpu.memory_space<vmem>>, %arg5: memref<1x8x32x8xf32, #tpu.memory_space<vmem>>) attributes {dimension_semantics = [#tpu.dimension_semantics<parallel>, #tpu.dimension_semantics<parallel>], iteration_bounds = array<i64: 2, 4>, scalar_prefetch = 0 : i64, scratch_operands = 0 : i64, tpu.core_type = #tpu.core_type<tc>, window_params = [{transform_indices = @transform_0, window_bounds = array<i64: 1, 34, 34, 4>}, {pipeline_mode = #tpu.pipeline_mode<synchronous>, transform_indices = @transform_1, window_bounds = array<i64: 36, 8>}, {pipeline_mode = #tpu.pipeline_mode<synchronous>, transform_indices = @transform_2, window_bounds = array<i64: 1, 8>}, {transform_indices = @transform_3, window_bounds = array<i64: 1, 8, 32, 8>}]} {
    %c8_i32 = arith.constant 8 : i32
    %0 = arith.muli %arg1, %c8_i32 : i32
    %1 = tpu.assume_multiple %0, 8 : i32
    %c0 = arith.constant 0 : index
    %2 = arith.index_cast %1 : i32 to index
    %c0_0 = arith.constant 0 : index
    %c0_1 = arith.constant 0 : index
    %3 = vector.load %arg2[%c0, %2, %c0_0, %c0_1] : memref<1x34x34x4xbf16, #tpu.memory_space<vmem>>, vector<1x10x34x4xbf16>
    %4 = vector.shape_cast %3 : vector<1x10x34x4xbf16> to vector<10x34x4xbf16>
    %5 = vector.extract_strided_slice %4 {offsets = [0, 0, 0], sizes = [8, 32, 4], strides = [1, 1, 1]} : vector<10x34x4xbf16> to vector<8x32x4xbf16>
    %6 = vector.shape_cast %5 : vector<8x32x4xbf16> to vector<256x4xbf16>
    %7 = vector.extract_strided_slice %4 {offsets = [0, 1, 0], sizes = [8, 32, 4], strides = [1, 1, 1]} : vector<10x34x4xbf16> to vector<8x32x4xbf16>
    %8 = vector.shape_cast %7 : vector<8x32x4xbf16> to vector<256x4xbf16>
    %9 = vector.extract_strided_slice %4 {offsets = [0, 2, 0], sizes = [8, 32, 4], strides = [1, 1, 1]} : vector<10x34x4xbf16> to vector<8x32x4xbf16>
    %10 = vector.shape_cast %9 : vector<8x32x4xbf16> to vector<256x4xbf16>
    %11 = vector.extract_strided_slice %4 {offsets = [1, 0, 0], sizes = [8, 32, 4], strides = [1, 1, 1]} : vector<10x34x4xbf16> to vector<8x32x4xbf16>
    %12 = vector.shape_cast %11 : vector<8x32x4xbf16> to vector<256x4xbf16>
    %13 = vector.extract_strided_slice %4 {offsets = [1, 1, 0], sizes = [8, 32, 4], strides = [1, 1, 1]} : vector<10x34x4xbf16> to vector<8x32x4xbf16>
    %14 = vector.shape_cast %13 : vector<8x32x4xbf16> to vector<256x4xbf16>
    %15 = vector.extract_strided_slice %4 {offsets = [1, 2, 0], sizes = [8, 32, 4], strides = [1, 1, 1]} : vector<10x34x4xbf16> to vector<8x32x4xbf16>
    %16 = vector.shape_cast %15 : vector<8x32x4xbf16> to vector<256x4xbf16>
    %17 = vector.extract_strided_slice %4 {offsets = [2, 0, 0], sizes = [8, 32, 4], strides = [1, 1, 1]} : vector<10x34x4xbf16> to vector<8x32x4xbf16>
    %18 = vector.shape_cast %17 : vector<8x32x4xbf16> to vector<256x4xbf16>
    %19 = vector.extract_strided_slice %4 {offsets = [2, 1, 0], sizes = [8, 32, 4], strides = [1, 1, 1]} : vector<10x34x4xbf16> to vector<8x32x4xbf16>
    %20 = vector.shape_cast %19 : vector<8x32x4xbf16> to vector<256x4xbf16>
    %21 = vector.extract_strided_slice %4 {offsets = [2, 2, 0], sizes = [8, 32, 4], strides = [1, 1, 1]} : vector<10x34x4xbf16> to vector<8x32x4xbf16>
    %22 = vector.shape_cast %21 : vector<8x32x4xbf16> to vector<256x4xbf16>
    %23 = tpu.concatenate %6, %8, %10, %12, %14, %16, %18, %20, %22 in 1 : vector<256x4xbf16>, vector<256x4xbf16>, vector<256x4xbf16>, vector<256x4xbf16>, vector<256x4xbf16>, vector<256x4xbf16>, vector<256x4xbf16>, vector<256x4xbf16>, vector<256x4xbf16> -> vector<256x36xbf16>
    %c0_2 = arith.constant 0 : index
    %c0_3 = arith.constant 0 : index
    %24 = vector.load %arg3[%c0_2, %c0_3] : memref<36x8xbf16, #tpu.memory_space<vmem>>, vector<36x8xbf16>
    %cst = arith.constant dense<0.000000e+00> : vector<256x8xf32>
    %25 = tpu.matmul %23, %24, %cst {dimension_numbers = #tpu.dot_dimension_numbers<[1], [0], [0], [1], [0, 0, 1, 1], [], []>} : vector<256x36xbf16>, vector<36x8xbf16>, vector<256x8xf32> -> vector<256x8xf32>
    %c0_4 = arith.constant 0 : index
    %c0_5 = arith.constant 0 : index
    %26 = vector.load %arg4[%c0_4, %c0_5] : memref<1x8xf32, #tpu.memory_space<vmem>>, vector<1x8xf32>
    %27 = vector.broadcast %26 : vector<1x8xf32> to vector<256x8xf32>
    %28 = arith.addf %25, %27 : vector<256x8xf32>
    %29 = vector.shape_cast %28 : vector<256x8xf32> to vector<8x32x8xf32>
    %c0_6 = arith.constant 0 : index
    %c0_7 = arith.constant 0 : index
    %c0_8 = arith.constant 0 : index
    %c0_9 = arith.constant 0 : index
    %30 = vector.load %arg5[%c0_6, %c0_7, %c0_8, %c0_9] : memref<1x8x32x8xf32, #tpu.memory_space<vmem>>, vector<1x8x32x8xf32>
    %31 = vector.shape_cast %30 : vector<1x8x32x8xf32> to vector<8x32x8xf32>
    %32 = vector.shape_cast %29 : vector<8x32x8xf32> to vector<1x8x32x8xf32>
    tpu.vector_store %arg5[%c0_6, %c0_7, %c0_8, %c0_9], %32 {strides = array<i32>} : memref<1x8x32x8xf32, #tpu.memory_space<vmem>>, vector<1x8x32x8xf32>,
    return
  }
  func.func @transform_0(%arg0: i32, %arg1: i32) -> (i32, i32, i32, i32) {
    %c0_i32 = arith.constant 0 : i32
    %c0_i32_0 = arith.constant 0 : i32
    %c0_i32_1 = arith.constant 0 : i32
    %c0_i32_2 = arith.constant 0 : i32
    return %arg0, %c0_i32, %c0_i32_0, %c0_i32_1 : i32, i32, i32, i32
  }
  func.func @transform_1(%arg0: i32, %arg1: i32) -> (i32, i32) {
    %c0_i32 = arith.constant 0 : i32
    %c0_i32_0 = arith.constant 0 : i32
    %c0_i32_1 = arith.constant 0 : i32
    return %c0_i32, %c0_i32_0 : i32, i32
  }
  func.func @transform_2(%arg0: i32, %arg1: i32) -> (i32, i32) {
    %c0_i32 = arith.constant 0 : i32
    %c0_i32_0 = arith.constant 0 : i32
    %c0_i32_1 = arith.constant 0 : i32
    return %c0_i32, %c0_i32_0 : i32, i32
  }
  func.func @transform_3(%arg0: i32, %arg1: i32) -> (i32, i32, i32, i32) {
    %c0_i32 = arith.constant 0 : i32
    %c0_i32_0 = arith.constant 0 : i32
    %c0_i32_1 = arith.constant 0 : i32
    return %arg0, %arg1, %c0_i32, %c0_i32_0 : i32, i32, i32, i32
  }
}

</mosaic_0001>

<bundles_post_ra>
// kernel: tpu_custom_call.1
= control target key start
LH: loop header
LB: loop body
LE: loop exit
PB: predicated region body
PF: predicated region fallthrough
CT: control target
= control target key end

     0   :  { %s2261_s12 = smov 0   ;;  %s2263_s13 = smov 0   ;;  %s3597_s0 = inlined_call_operand.vmem [shape: bf16[2,34,34,4], index: 0, kind: input, shape index: {}]   ;;  %s3598_s1 = inlined_call_operand.vmem [shape: bf16[36,8], index: 1, kind: input, shape index: {}]   ;;  %s3599_s2 = inlined_call_operand.vmem [shape: f32[1,8], index: 2, kind: input, shape index: {}]   ;;  %s3600_s3 = inlined_call_operand.vmem [shape: f32[2,32,32,8], index: 3, kind: output, shape index: {}]  }
   0x1   :  { %s2265_s14 = smov 0   ;;  %s2267_s15 = smov 0  }
   0x2   :  { %s2269_s16 = smov 0  }
   0x3 LB: > { %s22_s17 = sadd.s32 1, %s2223_s14  ;;  %s25_s18 = sadd.s32 1, %s2227_s15  ;;  %s2231_s16 = sphi %s2269_s16, %s13_s16   ;;  %s2227_s15 = sphi %s2267_s15, %s3661_s15   ;;  %s2223_s14 = sphi %s2265_s14, %s3660_s14   ;;  %s2219_s13 = sphi %s2263_s13, %s3659_s13   ;;  %s2215_s12 = sphi %s2261_s12, %s3658_s12  }
   0x4   : > { %p23_p0 = scmp.ge.s32.totalorder %s22_s17, 4  ;;  %p1946_p1 = scmp.ge.s32.totalorder %s2231_s16, 1 }
   0x5   : > { %p151_p2 = scmp.lt.s32.totalorder %s2231_s16, 9 }
   0x6   : > { %s3663_s17 = smov (%p23_p0, %s22_s17), 0  ;;  %s3665_s18 = smov (!%p23_p0, %s25_s18), %s2227_s15 }
   0x7   : > { %p152_p3 = pnand %p1946_p1, %p151_p2  ;;  %p27_p4 = scmp.ge.s32.totalorder %s3665_s18, 2 }
   0x9   : > { %s3667_s18 = smov (%p27_p4, %s3665_s18), 0  ;;  %155 = sbr.rel (%p152_p3) target bundleno = 630 (0x276), region = 32 }
  0x10   : > { %p180_p5 = scmp.lt.s32.totalorder %s2219_s13, 1  ;;  %s2047_s19 = smul.u32 160, %s2215_s12  ;;  %vm646_vm0 = vcmask 1042432   ;;  %vm647_vm1 = vcmask 1046532   ;;  %vm251_vm3 = vsmask.f32 3328 }
  0x11   : > { %s2233_s25 = smov 12   ;;  %vm2374_vm2 = vmor %vm646_vm0, %vm647_vm1  ;;  %vm252_vm4 = vsmask.f32 7440  ;;  %s2234_s26 = smov 8   ;;  %vm1653_vm6 = vcmask 1041408   ;;  %vm1313_vm7 = vcmask 31744  }
  0x12   : > { %s3669_s13 = smov (!%p180_p5, %s2219_s13), 1  ;;  %vm2435_vm5 = vmor %vm251_vm3, %vm252_vm4  ;;  %s2235_s27 = smov 4   ;;  %vm1362_vm8 = vcmask 64512   ;;  %vm1395_vm9 = vcmask 97280   ;;  %vm1428_vm10 = vcmask 130048   ;;  %vm1461_vm11 = vcmask 162816  }
  0x13   : > { %s2113_s20 = smul.u32 680, %s3669_s13  ;;  %s2236_s28 = smov 16   ;;  %vm1494_vm12 = vcmask 195584   ;;  %vm1527_vm13 = vcmask 228352   ;;  %vm1560_vm14 = vcmask 261120   ;;  %vm1620_vm15 = vcmask 293888  }
  0x14   : > { %s2237_s29 = smov 20   ;;  %s2238_s30 = smov 24  }
  0x15   : > { %s184_s23 = scalar_lea.vmem %s3597_s0, %s2113_s20  ;;  %s2239_s8 = smov 28  }
  0x16   : > { %s2300_s24 = scalar_lea.vmem %s184_s23, %s2047_s19  ;;  %s2240_s9 = smov 32  }
  0x17   : > { %v2303_v0 = vld [vmem:[%s2300_s24 + $0x64] sm:$0xf]  ;;  %v2306_v1 = vld [vmem:[%s2300_s24 + $0x68] sm:$0xf]  ;;  %v2309_v2 = vld [vmem:[%s2300_s24 + $0x14] sm:$0xf] }
  0x18   : > { %v488_v3 = vshrl.u32 %v2306_v1, 16  ;;  %v2314_v4 = vcombine.low %v2303_v0, %v2306_v1  ;;  %v475_v5 = vshrl.u32 %v2303_v0, 16  ;;  %v478_v6 = vshll.u32 %v2303_v0, 16  ;;  %v2319_v7 = vld [vmem:[%s2300_s24 + $0x18] sm:$0xf]  ;;  %s1948_s19 = sshll.u32 %s2215_s12, 3 }
  0x19   : > { %v308_v8 = vshll.u32 %v2319_v7, 16  ;;  %v312_v9 = vshrl.u32 %v2319_v7, 16  ;;  %v2325_v10 = vcombine.low %v2309_v2, %v2319_v7  ;;  %v299_v11 = vshrl.u32 %v2309_v2, 16  ;;  %v2329_v12 = vld [vmem:[%s2300_s24 + $0x6c] sm:$0xf]  ;;  %p188_p6 = scmp.lt.s32.totalorder %s1948_s19, 31 }
  0x1a   : > { %3620 = vst [vmem:[#allocation2_spill] sm:$0xff] %v2314_v4  ;;  %1107 = vrot.lane.b32.xlu1 %v2314_v4, %s2233_s25  ;;  %v302_v13 = vshll.u32 %v2309_v2, 16  ;;  %v2335_v14 = vld [vmem:[%s2300_s24 + $0x70] sm:$0xf]  ;;  %v498_v15 = vshrl.u32 %v2329_v12, 16  ;;  %s1950_s21 = sshll.u32 %s3669_s13, 7 }
  0x1b   : > { %3621 = vst [vmem:[#allocation3_spill] sm:$0xff] %v2325_v10  ;;  %v2339_v16 = vld [vmem:[%s2300_s24 + $0x1c] sm:$0xf]  ;;  %v2341_v17 = vrot.slane %v312_v9, 4  ;;  %1091 = vrot.lane.b32.xlu0 %v2325_v10, %s2233_s25  ;;  %v2345_v18 = vrot.slane %v299_v11, 4  ;;  %v508_v19 = vshrl.u32 %v2335_v14, 16  ;;  %v2350_v20 = vcombine.low %v2329_v12, %v2335_v14 }
  0x1c   : > { %v2353_v21 = vld [vmem:[%s2300_s24 + $0x20] sm:$0xf]  ;;  %v2355_v22 = vrot.slane %v302_v13, 5  ;;  %v322_v23 = vshrl.u32 %v2339_v16, 16  ;;  %v2364_v26 = vld [vmem:[%s2300_s24 + $0x50] sm:$0xf] }
  0x1d   : > { %3622 = vst [vmem:[#allocation4_spill] sm:$0xff] %v2350_v20  ;;  %v332_v24 = vshrl.u32 %v2353_v21, 16  ;;  %v2361_v25 = vcombine.low %v2339_v16, %v2353_v21  ;;  %v2367_v27 = vld [vmem:[%s2300_s24 + $0x54] sm:$0xf]  ;;  %v2370_v28 = vld [vmem:[%s2300_s24 + $0x58] sm:$0xf] }
  0x1e   : > { %v1959_v30 = vrot.slane %v2364_v26, 9  ;;  %v431_v31 = vshrl.u32 %v2364_v26, 16  ;;  %1109 = vrot.lane.b32.xlu1 %v2350_v20, %s2233_s25  ;;  %v703_v32 = vrot.slane %v2367_v27, 5  ;;  %v706_v33 = vrot.slane %v2370_v28, 5  ;;  %v201_v34 = vld [vmem:[%s2300_s24] sm:$0xf] }
  0x1f   : > { %3623 = vst [vmem:[#allocation5_spill] sm:$0xff] %v2361_v25  ;;  %v2386_v35 = vld [vmem:[%s2300_s24 + $0x4] sm:$0xf]  ;;  %1093 = vrot.lane.b32.xlu0 %v2361_v25, %s2233_s25  ;;  %v203_v36 = vld [vmem:[%s2300_s24 + $0x8] sm:$0xf]  ;;  %v1955_v37 = vrot.slane %v201_v34, 9  ;;  %v305_v40 = vor.u32 %v2355_v22, %v2345_v18 }
  0x20   : > { %v651_v38 = vrot.slane %v2386_v35, 5  ;;  %v2393_v39 = vld [vmem:[%s2300_s24 + $0x5c] sm:$0xf]  ;;  %v704_v41 = vsel %vm2374_vm2, %v1959_v30, %v703_v32  ;;  %v705_v42 = vrot.slane %v703_v32, 4  ;;  %v654_v43 = vrot.slane %v203_v36, 5  ;;  %s3671_s19 = smov (!%p188_p6, %s1948_s19), 31 }
  0x21   : > { %v2400_v44 = vld [vmem:[%s2300_s24 + $0x60] sm:$0x1]  ;;  %v708_v45 = vrot.slane %v706_v33, 4  ;;  %v709_v48 = vrot.slane %v2393_v39, 5  ;;  %v204_v50 = vld [vmem:[%s2300_s24 + $0xc] sm:$0xf] }
  0x22   : > { %v652_v46 = vsel %vm2374_vm2, %v1955_v37, %v651_v38  ;;  %v653_v47 = vrot.slane %v651_v38, 4  ;;  %v712_v49 = vrot.slane %v2400_v44, 5  ;;  %v707_v51 = vsel %vm2374_vm2, %v705_v42, %v706_v33  ;;  %v205_v52 = vld [vmem:[%s2300_s24 + $0x10] sm:$0x1]  ;;  %v2489_v22 = vld [vmem:[%s2300_s24 + $0x74] sm:$0x1] }
  0x23   : > { %v656_v53 = vrot.slane %v654_v43, 4  ;;  %v657_v54 = vrot.slane %v204_v50, 5  ;;  %v274_v55 = vshll.u32 %v203_v36, 16  ;;  %v2410_v56 = vcombine.low %v704_v41, %v707_v51  ;;  %v2189_v25 = vld [vmem:[%s2300_s24 + $0x8] sm:$0xf]  ;;  %s1949_s20 = sshll.u32 %s3671_s19, 2 }
  0x24   : > { %v655_v57 = vsel %vm2374_vm2, %v653_v47, %v654_v43  ;;  %v710_v58 = vsel %vm2374_vm2, %v708_v45, %v709_v48  ;;  %v711_v59 = vrot.slane %v709_v48, 4  ;;  %v660_v63 = vrot.slane %v205_v52, 5  ;;  %v2190_v20 = vld [vmem:[%s2300_s24 + $0xc] sm:$0xf]  ;;  %v2191_v4 = vld [vmem:[%s2300_s24 + $0x58] sm:$0xf]  ;;  %s192_s22 = sadd.s32 %s1950_s21, %s1949_s20 }
  0x25   : > { %v1997_v60 = vcombine.low %v652_v46, %v655_v57  ;;  %v658_v61 = vsel %vm2374_vm2, %v656_v53, %v657_v54  ;;  %v659_v62 = vrot.slane %v657_v54, 4  ;;  %1069 = vrot.lane.b32.xlu1 %v2410_v56, %s2234_s26  ;;  %v276_v11 = vrot.slane %v274_v55, 5  ;;  %s1951_s23 = sshll.u32 %s192_s22, 3 }
  0x26   : > { %v713_v9 = vsel %vm2374_vm2, %v711_v59, %v712_v49  ;;  %v278_v13 = vshrl.u32 %v203_v36, 16  ;;  %v284_v30 = vshll.u32 %v204_v50, 16  ;;  %v288_v37 = vshrl.u32 %v204_v50, 16 }
  0x27   : > { %1053 = vrot.lane.b32.xlu0 %v1997_v60, %s2234_s26  ;;  %v2423_v32 = vcombine.low %v710_v58, %v713_v9  ;;  %v661_v33 = vsel %vm2374_vm2, %v659_v62, %v660_v63  ;;  %v294_v38 = vshll.u32 %v205_v52, 16  ;;  %v255_v45 = vshrl.u32 %v201_v34, 16 }
  0x28   : > { %v1998_v41 = vcombine.low %v658_v61, %v661_v33  ;;  %v280_v42 = vrot.slane %v278_v13, 4  ;;  %v286_v43 = vrot.slane %v284_v30, 5  ;;  %v290_v46 = vrot.slane %v288_v37, 4 }
  0x29   : > { %v296_v47 = vrot.slane %v294_v38, 5  ;;  %v258_v48 = vshll.u32 %v201_v34, 16  ;;  %v264_v49 = vshll.u32 %v2386_v35, 16  ;;  %1071 = vrot.lane.b32.xlu1 %v2423_v32, %s2234_s26  ;;  %v257_v51 = vrot.slane %v255_v45, 4 }
  0x2a   : > { %v281_v36 = vor.u32 %v280_v42, %v276_v11  ;;  %v268_v53 = vshrl.u32 %v2386_v35, 16  ;;  %v450_v54 = vshll.u32 %v2370_v28, 16  ;;  %v291_v34 = vor.u32 %v290_v46, %v286_v43 }
  0x2b   : > { %1055 = vrot.lane.b32.xlu0 %v1998_v41, %s2234_s26  ;;  %v260_v52 = vrot.slane %v258_v48, 5  ;;  %v266_v55 = vrot.slane %v264_v49, 5  ;;  %v454_v57 = vshrl.u32 %v2370_v28, 16  ;;  %v460_v35 = vshll.u32 %v2393_v39, 16 }
  0x2c   : > { %v282_v58 = vrot.slane %v281_v36, 4  ;;  %v270_v59 = vrot.slane %v268_v53, 4  ;;  %v2440_v60 = vrot.slane %v450_v54, 5  ;;  %v292_v61 = vrot.slane %v291_v34, 4 }
  0x2d   : > { %v261_v62 = vor.u32 %v260_v52, %v257_v51  ;;  %v456_v63 = vrot.slane %v454_v57, 4  ;;  %v464_v9 = vshrl.u32 %v2393_v39, 16  ;;  %v462_v33 = vrot.slane %v460_v35, 5 }
  0x2e   : > { %v287_v13 = vsel %vm2435_vm5, %v282_v58, %v286_v43  ;;  %v271_v30 = vor.u32 %v270_v59, %v266_v55  ;;  %v470_v37 = vshll.u32 %v2400_v44, 16  ;;  %v297_v28 = vsel %vm2435_vm5, %v292_v61, %v296_v47 }
  0x2f   : > { %v262_v38 = vrot.slane %v261_v62, 4  ;;  %v457_v41 = vor.u32 %v456_v63, %v2440_v60  ;;  %v466_v42 = vrot.slane %v464_v9, 4  ;;  %v1982_v45 = vcombine.low %v287_v13, %v297_v28 }
  0x30   : > { %v272_v46 = vrot.slane %v271_v30, 4  ;;  %v472_v48 = vrot.slane %v470_v37, 5  ;;  %v433_v39 = vrot.slane %v431_v31, 4  ;;  %v434_v44 = vshll.u32 %v2364_v26, 16 }
  0x31   : > { %v267_v43 = vsel %vm2435_vm5, %v262_v38, %v266_v55  ;;  %v458_v49 = vrot.slane %v457_v41, 4  ;;  %v467_v36 = vor.u32 %v466_v42, %v462_v33  ;;  %975 = vrot.lane.b32.xlu1 %v1982_v45, %s2235_s27  ;;  %v440_v51 = vshll.u32 %v2367_v27, 16 }
  0x32   : > { %v277_v47 = vsel %vm2435_vm5, %v272_v46, %v276_v11  ;;  %v444_v53 = vshrl.u32 %v2367_v27, 16  ;;  %v477_v31 = vrot.slane %v475_v5, 4  ;;  %v436_v55 = vrot.slane %v434_v44, 5 }
  0x33   : > { %v1981_v54 = vcombine.low %v267_v43, %v277_v47  ;;  %v463_v34 = vsel %vm2435_vm5, %v458_v49, %v462_v33  ;;  %v468_v52 = vrot.slane %v467_v36, 4  ;;  %v442_v26 = vrot.slane %v440_v51, 5 }
  0x34   : > { %v446_v57 = vrot.slane %v444_v53, 4  ;;  %v480_v58 = vrot.slane %v478_v6, 5  ;;  %v484_v11 = vshll.u32 %v2306_v1, 16  ;;  %v437_v59 = vor.u32 %v436_v55, %v433_v39 }
  0x35   : > { %973 = vrot.lane.b32.xlu0 %v1981_v54, %s2235_s27  ;;  %v473_v27 = vsel %vm2435_vm5, %v468_v52, %v472_v48  ;;  %v490_v5 = vrot.slane %v488_v3, 4  ;;  %v494_v35 = vshll.u32 %v2329_v12, 16  ;;  %v306_v30 = vrot.slane %v305_v40, 4 }
  0x36   : > { %v2473_v61 = vcombine.low %v463_v34, %v473_v27  ;;  %v447_v62 = vor.u32 %v446_v57, %v442_v26  ;;  %v481_v63 = vor.u32 %v480_v58, %v477_v31  ;;  %v486_v9 = vrot.slane %v484_v11, 5 }
  0x37   : > { %v438_v6 = vrot.slane %v437_v59, 4  ;;  %v496_v13 = vrot.slane %v494_v35, 5  ;;  %v310_v33 = vrot.slane %v308_v8, 5  ;;  %v318_v38 = vshll.u32 %v2339_v16, 16 }
  0x38   : > { %991 = vrot.lane.b32.xlu1 %v2473_v61, %s2235_s27  ;;  %v448_v3 = vrot.slane %v447_v62, 4  ;;  %v482_v37 = vrot.slane %v481_v63, 4  ;;  %v491_v28 = vor.u32 %v490_v5, %v486_v9  ;;  %v500_v8 = vrot.slane %v498_v15, 4 }
  0x39   : > { %v443_v41 = vsel %vm2435_vm5, %v438_v6, %v442_v26  ;;  %v311_v42 = vsel %vm2435_vm5, %v306_v30, %v310_v33  ;;  %v315_v18 = vor.u32 %v2341_v17, %v310_v33  ;;  %v320_v48 = vrot.slane %v318_v38, 5 }
  0x3a   : > { %v453_v40 = vsel %vm2435_vm5, %v448_v3, %v2440_v60  ;;  %v487_v45 = vsel %vm2435_vm5, %v482_v37, %v486_v9  ;;  %v492_v46 = vrot.slane %v491_v28, 4  ;;  %v501_v49 = vor.u32 %v500_v8, %v496_v13  ;;  %v2507_v60 = vld [vmem:[%s2300_s24 + $0x24] sm:$0x1] }
  0x3b   : > { %v2498_v39 = vcombine.low %v443_v41, %v453_v40  ;;  %v316_v43 = vrot.slane %v315_v18, 4  ;;  %v504_v17 = vshll.u32 %v2335_v14, 16  ;;  %v510_v15 = vrot.slane %v508_v19, 4 }
  0x3c   : > { %v497_v36 = vsel %vm2435_vm5, %v492_v46, %v496_v13  ;;  %v514_v44 = vshll.u32 %v2489_v22, 16  ;;  %v324_v47 = vrot.slane %v322_v23, 4  ;;  %v502_v31 = vrot.slane %v501_v49, 4  ;;  %v2570_v49 = vld [vmem:[%s2300_s24 + $0x28] sm:$0xf] }
  0x3d   : > { %989 = vrot.lane.b32.xlu0 %v2498_v39, %s2235_s27  ;;  %v2513_v51 = vcombine.low %v487_v45, %v497_v36  ;;  %v321_v53 = vsel %vm2435_vm5, %v316_v43, %v320_v48  ;;  %v506_v54 = vrot.slane %v504_v17, 5  ;;  %v328_v55 = vshll.u32 %v2353_v21, 16  ;;  %v2561_v45 = vld [vmem:[%s2300_s24 + $0x7c] sm:$0xf]  ;;  %v2573_v17 = vld [vmem:[%s2300_s24 + $0x2c] sm:$0xf] }
  0x3e   : > { %v2517_v34 = vcombine.low %v311_v42, %v321_v53  ;;  %v516_v19 = vrot.slane %v514_v44, 5  ;;  %v325_v52 = vor.u32 %v324_v47, %v320_v48  ;;  %v334_v57 = vrot.slane %v332_v24, 4  ;;  %v2552_v42 = vld [vmem:[%s2300_s24 + $0x78] sm:$0xf]  ;;  %v2582_v53 = vld [vmem:[%s2300_s24 + $0x80] sm:$0xf] }
  0x3f   : > { %3628 = vst [vmem:[#allocation6_spill] sm:$0xff] %v2513_v51  ;;  %1145 = vrot.lane.b32.xlu1 %v2513_v51, %s2236_s28  ;;  %v507_v23 = vsel %vm2435_vm5, %v502_v31, %v506_v54  ;;  %v511_v26 = vor.u32 %v510_v15, %v506_v54  ;;  %v338_v58 = vshll.u32 %v2507_v60, 16  ;;  %v330_v27 = vrot.slane %v328_v55, 5  ;;  %v2585_v31 = vld [vmem:[%s2300_s24 + $0x84] sm:$0xf] }
  0x40   : > { %v326_v11 = vrot.slane %v325_v52, 4  ;;  %v1960_v59 = vrot.slane %v2303_v0, 9  ;;  %v716_v5 = vrot.slane %v2306_v1, 5  ;;  %v719_v63 = vrot.slane %v2329_v12, 5  ;;  %v2595_v52 = vld [vmem:[%s2300_s24 + $0x30] sm:$0xf] }
  0x41   : > { %1129 = vrot.lane.b32.xlu0 %v2517_v34, %s2236_s28  ;;  %v512_v35 = vrot.slane %v511_v26, 4  ;;  %v340_v62 = vrot.slane %v338_v58, 5  ;;  %v1956_v9 = vrot.slane %v2309_v2, 9  ;;  %v335_v6 = vor.u32 %v334_v57, %v330_v27  ;;  %v2598_v55 = vld [vmem:[%s2300_s24 + $0x34] sm:$0xf] }
  0x42   : > { %v331_v24 = vsel %vm2435_vm5, %v326_v11, %v330_v27  ;;  %v717_v13 = vsel %vm2374_vm2, %v1960_v59, %v716_v5  ;;  %v718_v0 = vrot.slane %v716_v5, 4  ;;  %v664_v30 = vrot.slane %v2319_v7, 5 }
  0x43   : > { %v517_v1 = vsel %vm2435_vm5, %v512_v35, %v516_v19  ;;  %v667_v33 = vrot.slane %v2339_v16, 5  ;;  %v721_v12 = vrot.slane %v719_v63, 4  ;;  %v336_v2 = vrot.slane %v335_v6, 4 }
  0x44   : > { %v2541_v3 = vcombine.low %v507_v23, %v517_v1  ;;  %v720_v37 = vsel %vm2374_vm2, %v718_v0, %v719_v63  ;;  %v722_v28 = vrot.slane %v2335_v14, 5  ;;  %v665_v41 = vsel %vm2374_vm2, %v1956_v9, %v664_v30 }
  0x45   : > { %v2546_v38 = vcombine.low %v717_v13, %v720_v37  ;;  %v666_v7 = vrot.slane %v664_v30, 4  ;;  %v725_v16 = vrot.slane %v2489_v22, 5  ;;  %v341_v18 = vsel %vm2435_vm5, %v336_v2, %v340_v62 }
  0x46   : > { %3629 = vst [vmem:[#allocation7_spill] sm:$0xff] %v2541_v3  ;;  %1147 = vrot.lane.b32.xlu1 %v2541_v3, %s2236_s28  ;;  %v723_v14 = vsel %vm2374_vm2, %v721_v12, %v722_v28  ;;  %v724_v8 = vrot.slane %v722_v28, 4  ;;  %v669_v40 = vrot.slane %v667_v33, 4  ;;  %v2563_v46 = vcombine.low %v331_v24, %v341_v18 }
  0x47   : > { %3630 = vst [vmem:[#allocation8_spill] sm:$0xff] %v2546_v38  ;;  %v668_v22 = vsel %vm2374_vm2, %v666_v7, %v667_v33  ;;  %v670_v48 = vrot.slane %v2353_v21, 5  ;;  %v673_v43 = vrot.slane %v2507_v60, 5  ;;  %v519_v44 = vshrl.u32 %v2552_v42, 16 }
  0x48   : > { %v2575_v36 = vcombine.low %v665_v41, %v668_v22  ;;  %v726_v15 = vsel %vm2374_vm2, %v724_v8, %v725_v16  ;;  %v522_v47 = vshll.u32 %v2552_v42, 16  ;;  %1131 = vrot.lane.b32.xlu0 %v2563_v46, %s2236_s28  ;;  %v532_v19 = vshrl.u32 %v2561_v45, 16 }
  0x49   : > { %v2589_v21 = vcombine.low %v723_v14, %v726_v15  ;;  %v671_v60 = vsel %vm2374_vm2, %v669_v40, %v670_v48  ;;  %v672_v54 = vrot.slane %v670_v48, 4  ;;  %v2604_v23 = vcombine.low %v2552_v42, %v2561_v45  ;;  %v2640_v48 = vld [vmem:[%s2300_s24 + $0x88] sm:$0x1] }
  0x4a   : > { %1183 = vrot.lane.b32.xlu1 %v2546_v38, %s2237_s29  ;;  %v343_v26 = vshrl.u32 %v2570_v49, 16  ;;  %v346_v57 = vshll.u32 %v2570_v49, 16  ;;  %v356_v58 = vshrl.u32 %v2573_v17, 16  ;;  %v2613_v27 = vcombine.low %v2570_v49, %v2573_v17 }
  0x4b   : > { %3631 = vst [vmem:[#allocation9_spill] sm:$0xff] %v2589_v21  ;;  %3632 = vst [vmem:[#allocation10_spill] sm:$0xff] %v2604_v23  ;;  %v674_v11 = vsel %vm2374_vm2, %v672_v54, %v673_v43  ;;  %v542_v59 = vshrl.u32 %v2582_v53, 16  ;;  %v552_v5 = vshrl.u32 %v2585_v31, 16  ;;  %v2621_v62 = vcombine.low %v2582_v53, %v2585_v31 }
  0x4c   : > { %3633 = vst [vmem:[#allocation11_spill] sm:$0xff] %v2613_v27  ;;  %v2617_v35 = vcombine.low %v671_v60, %v674_v11  ;;  %v366_v63 = vshrl.u32 %v2595_v52, 16  ;;  %v376_v9 = vshrl.u32 %v2598_v55, 16  ;;  %1167 = vrot.lane.b32.xlu0 %v2575_v36, %s2237_s29  ;;  %v2629_v24 = vcombine.low %v2595_v52, %v2598_v55 }
  0x4d   : > { %3634 = vst [vmem:[#allocation12_spill] sm:$0xff] %v2621_v62  ;;  %v521_v6 = vrot.slane %v519_v44, 4  ;;  %v524_v13 = vrot.slane %v522_v47, 5  ;;  %v528_v0 = vshll.u32 %v2561_v45, 16  ;;  %v534_v1 = vrot.slane %v532_v19, 4 }
  0x4e   : > { %3635 = vst [vmem:[#allocation13_spill] sm:$0xff] %v2629_v24  ;;  %1185 = vrot.lane.b32.xlu1 %v2589_v21, %s2237_s29  ;;  %v538_v30 = vshll.u32 %v2582_v53, 16  ;;  %v345_v33 = vrot.slane %v343_v26, 4  ;;  %v348_v12 = vrot.slane %v346_v57, 5  ;;  %v352_v28 = vshll.u32 %v2573_v17, 16 }
  0x4f   : > { %v525_v2 = vor.u32 %v524_v13, %v521_v6  ;;  %v530_v37 = vrot.slane %v528_v0, 5  ;;  %v358_v41 = vrot.slane %v356_v58, 4  ;;  %v362_v18 = vshll.u32 %v2595_v52, 16  ;;  %v2178_v58 = vld [vmem:[%s3598_s1] sm:$0xff]  }
  0x50   : > { %v540_v7 = vrot.slane %v538_v30, 5  ;;  %v349_v16 = vor.u32 %v348_v12, %v345_v33  ;;  %v544_v14 = vrot.slane %v542_v59, 4  ;;  %1169 = vrot.lane.b32.xlu0 %v2617_v35, %s2237_s29  ;;  %v354_v22 = vrot.slane %v352_v28, 5  ;;  %v2658_v30 = vld [vmem:[%s2300_s24 + $0x38] sm:$0x1]  ;;  %2067 = vmatprep.subr.bf16.mxu0 %v2178_v58 }
  0x51   : > { %v526_v8 = vrot.slane %v525_v2, 4  ;;  %v535_v40 = vor.u32 %v534_v1, %v530_v37  ;;  %v548_v43 = vshll.u32 %v2585_v31, 16  ;;  %v364_v44 = vrot.slane %v362_v18, 5  ;;  %2105 = vmatprep.subr.bf16.mxu1 %v2178_v58  ;;  %2068 = vmatpush3.bf16.msra.mxu0 %v2178_v58  ;;  %v2180_v18 = vld [vmem:[%s3598_s1 + $0x8] sm:$0xff]  }
  0x52   : > { %1221 = vrot.lane.b32.xlu1 %v2604_v23, %s2238_s30  ;;  %v350_v15 = vrot.slane %v349_v16, 4  ;;  %v545_v47 = vor.u32 %v544_v14, %v540_v7  ;;  %v554_v60 = vrot.slane %v552_v5, 4  ;;  %v359_v26 = vor.u32 %v358_v41, %v354_v22  ;;  %2108 = vmatpush3.bf16.msra.mxu1 %v2178_v58 }
  0x53   : > { %v531_v54 = vsel %vm2435_vm5, %v526_v8, %v530_v37  ;;  %v536_v19 = vrot.slane %v535_v40, 4  ;;  %v550_v57 = vrot.slane %v548_v43, 5  ;;  %v558_v6 = vshll.u32 %v2640_v48, 16  ;;  %2069 = vmatprep.subr.bf16.mxu0 %v2180_v18  ;;  %2106 = vmatprep.subr.bf16.mxu1 %v2180_v18 }
  0x54   : > { %v355_v11 = vsel %vm2435_vm5, %v350_v15, %v354_v22  ;;  %v546_v59 = vrot.slane %v545_v47, 4  ;;  %v368_v13 = vrot.slane %v366_v63, 4  ;;  %1205 = vrot.lane.b32.xlu0 %v2613_v27, %s2238_s30  ;;  %v360_v0 = vrot.slane %v359_v26, 4 }
  0x55   : > { %v541_v5 = vsel %vm2435_vm5, %v536_v19, %v540_v7  ;;  %v555_v1 = vor.u32 %v554_v60, %v550_v57  ;;  %v372_v33 = vshll.u32 %v2598_v55, 16  ;;  %v560_v2 = vrot.slane %v558_v6, 5  ;;  %2070 = vmatpush3.bf16.msra.mxu0 %v2180_v18 }
  0x56   : > { %1223 = vrot.lane.b32.xlu1 %v2621_v62, %s2238_s30  ;;  %v2663_v12 = vcombine.low %v531_v54, %v541_v5  ;;  %v551_v63 = vsel %vm2435_vm5, %v546_v59, %v550_v57  ;;  %v369_v37 = vor.u32 %v368_v13, %v364_v44  ;;  %v365_v28 = vsel %vm2435_vm5, %v360_v0, %v364_v44 }
  0x57   : > { %v556_v41 = vrot.slane %v555_v1, 4  ;;  %v374_v7 = vrot.slane %v372_v33, 5  ;;  %v378_v16 = vrot.slane %v376_v9, 4  ;;  %v2672_v14 = vcombine.low %v355_v11, %v365_v28  ;;  %2109 = vmatpush3.bf16.msra.mxu1 %v2180_v18  ;;  %v2771_v18 = vld [vmem:[%s2300_s24 + $0x3c] sm:$0xf] }
  0x58   : > { %v370_v8 = vrot.slane %v369_v37, 4  ;;  %v382_v40 = vshll.u32 %v2658_v30, 16  ;;  %v1961_v22 = vrot.slane %v2552_v42, 9  ;;  %1207 = vrot.lane.b32.xlu0 %v2629_v24, %s2238_s30  ;;  %v729_v15 = vrot.slane %v2561_v45, 5 }
  0x59   : > { %v561_v43 = vsel %vm2435_vm5, %v556_v41, %v560_v2  ;;  %v379_v9 = vor.u32 %v378_v16, %v374_v7  ;;  %v732_v44 = vrot.slane %v2582_v53, 5  ;;  %v1957_v54 = vrot.slane %v2570_v49, 9 }
  0x5a   : > { %1259 = vrot.lane.b32.xlu1 %v2663_v12, %s2239_s8  ;;  %v2684_v47 = vcombine.low %v551_v63, %v561_v43  ;;  %v375_v42 = vsel %vm2435_vm5, %v370_v8, %v374_v7  ;;  %v384_v60 = vrot.slane %v382_v40, 5  ;;  %v730_v45 = vsel %vm2374_vm2, %v1961_v22, %v729_v15  ;;  %v2777_v22 = vld [vmem:[%s2300_s24 + $0x40] sm:$0xf]  ;;  %v2780_v43 = vld [vmem:[%s2300_s24 + $0x94] sm:$0xf] }
  0x5b   : > { %v380_v19 = vrot.slane %v379_v9, 4  ;;  %v731_v26 = vrot.slane %v729_v15, 4  ;;  %v677_v53 = vrot.slane %v2573_v17, 5  ;;  %v680_v57 = vrot.slane %v2595_v52, 5 }
  0x5c   : > { %v735_v58 = vrot.slane %v2585_v31, 5  ;;  %1243 = vrot.lane.b32.xlu0 %v2672_v14, %s2239_s8  ;;  %v734_v52 = vrot.slane %v732_v44, 4  ;;  %v738_v0 = vrot.slane %v2640_v48, 5  ;;  %v683_v1 = vrot.slane %v2598_v55, 5 }
  0x5d   : > { %v385_v49 = vsel %vm2435_vm5, %v380_v19, %v384_v60  ;;  %v733_v11 = vsel %vm2374_vm2, %v731_v26, %v732_v44  ;;  %v679_v59 = vrot.slane %v677_v53, 4  ;;  %v678_v31 = vsel %vm2374_vm2, %v1957_v54, %v677_v53  ;;  %v2793_v19 = vld [vmem:[%s2300_s24 + $0x44] sm:$0xf] }
  0x5e   : > { %1261 = vrot.lane.b32.xlu1 %v2684_v47, %s2239_s8  ;;  %v2702_v17 = vcombine.low %v375_v42, %v385_v49  ;;  %v2704_v6 = vcombine.low %v730_v45, %v733_v11  ;;  %v737_v5 = vrot.slane %v735_v58, 4  ;;  %v682_v63 = vrot.slane %v680_v57, 4  ;;  %v2788_v42 = vld [vmem:[%s2300_s24 + $0x98] sm:$0xf] }
  0x5f   : > { %v681_v13 = vsel %vm2374_vm2, %v679_v59, %v680_v57  ;;  %v685_v2 = vrot.slane %v683_v1, 4  ;;  %v686_v37 = vrot.slane %v2658_v30, 5  ;;  %v736_v28 = vsel %vm2374_vm2, %v734_v52, %v735_v58 }
  0x60   : > { %1245 = vrot.lane.b32.xlu0 %v2702_v17, %s2239_s8  ;;  %v2714_v33 = vcombine.low %v678_v31, %v681_v13  ;;  %v739_v48 = vsel %vm2374_vm2, %v737_v5, %v738_v0  ;;  %v684_v41 = vsel %vm2374_vm2, %v682_v63, %v683_v1  ;;  %v387_v15 = vshrl.u32 %v2771_v18, 16  ;;  %v2804_v31 = vld [vmem:[%s2300_s24 + $0x48] sm:$0xf] }
  0x61   : > { %v2727_v55 = vcombine.low %v736_v28, %v739_v48  ;;  %v687_v30 = vsel %vm2374_vm2, %v685_v2, %v686_v37  ;;  %v390_v44 = vshll.u32 %v2771_v18, 16  ;;  %v400_v60 = vshrl.u32 %v2777_v22, 16 }
  0x62   : > { %1297 = vrot.lane.b32.xlu1 %v2704_v6, %s2240_s9  ;;  %v2735_v7 = vcombine.low %v684_v41, %v687_v30  ;;  %v586_v54 = vshrl.u32 %v2780_v43, 16  ;;  %v582_v58 = vshll.u32 %v2780_v43, 16  ;;  %v396_v49 = vshll.u32 %v2777_v22, 16 }
  0x63   : > { %v596_v11 = vshrl.u32 %v2788_v42, 16  ;;  %v592_v59 = vshll.u32 %v2788_v42, 16  ;;  %v410_v52 = vshrl.u32 %v2793_v19, 16  ;;  %v389_v13 = vrot.slane %v387_v15, 4 }
  0x64   : > { %1281 = vrot.lane.b32.xlu0 %v2714_v33, %s2240_s9  ;;  %v392_v0 = vrot.slane %v390_v44, 5  ;;  %v402_v1 = vrot.slane %v400_v60, 4  ;;  %v406_v63 = vshll.u32 %v2793_v19, 16  ;;  %v584_v37 = vrot.slane %v582_v58, 5 }
  0x65   : > { %v398_v28 = vrot.slane %v396_v49, 5  ;;  %v588_v48 = vrot.slane %v586_v54, 4  ;;  %v420_v41 = vshrl.u32 %v2804_v31, 16  ;;  %v594_v30 = vrot.slane %v592_v59, 5  ;;  %v2829_v59 = vld [vmem:[%s2300_s24 + $0x4c] sm:$0x1] }
  0x66   : > { %993 = vrot.lane.b32.xlu1 %v2513_v51, %s2235_s27  ;;  %v408_v15 = vrot.slane %v406_v63, 5  ;;  %v1966_v10 = vcombine.low %v2189_v25, %v2190_v20 }
  0x67   : > { %v403_v60 = vor.u32 %v402_v1, %v398_v28  ;;  %v589_v54 = vor.u32 %v588_v48, %v584_v37 }
  0x68   : > { %977 = vrot.lane.b32.xlu0 %v2517_v34, %s2235_s27  ;;  %v2182_v34 = vld [vmem:[%s3598_s1 + $0x10] ss:$0 sps:$4 sm:$0x33]  }
  0x69   : > { %2111 = vmatprep.subr.msk.bf16.mxu0 %vm1653_vm6, %v2182_v34  ;;  %2112 = vmatprep.subr.msk.bf16.mxu1 %vm1653_vm6, %v2182_v34  ;;  %v1655_v8 = vsel %vm1653_vm6, %v2182_v34, 0  ;;  %v598_v34 = vrot.slane %v596_v11, 4  ;;  %v422_v11 = vrot.slane %v420_v41, 4  ;;  %v404_v63 = vrot.slane %v403_v60, 4 }
  0x6a   : > { %1299 = vrot.lane.b32.xlu1 %v2727_v55, %s2240_s9  ;;  %2072 = vmatpush3.bf16.msra.mxu0 %v1655_v8  ;;  %v590_v48 = vrot.slane %v589_v54, 4 }
  0x6b   : > { %2110 = vmatpush3.bf16.msra.mxu1 %v1655_v8  ;;  %v409_v54 = vsel %vm2435_vm5, %v404_v63, %v408_v15 }
  0x6c   : > { %1283 = vrot.lane.b32.xlu0 %v2735_v7, %s2240_s9 }
  0x6e   : > { %995 = vrot.lane.b32.xlu1 %v2541_v3, %s2235_s27 }
  0x70   : > { %979 = vrot.lane.b32.xlu0 %v2563_v46, %s2235_s27  ;;  %v2761_v46 = vld [vmem:[%s2300_s24 + $0x8c] sm:$0xf] }
  0x71   : > { %v566_v16 = vshll.u32 %v2761_v46, 16 }
  0x72   : > { %1073 = vrot.lane.b32.xlu1 %v2546_v38, %s2234_s26 }
  0x73   : > { %v568_v26 = vrot.slane %v566_v16, 5  ;;  %v2815_v16 = vld [vmem:[%s2300_s24 + $0x9c] sm:$0x1] }
  0x74   : > { %1057 = vrot.lane.b32.xlu0 %v2575_v36, %s2234_s26  ;;  %v2766_v36 = vld [vmem:[%s2300_s24 + $0x90] sm:$0xf]  ;;  %v602_v58 = vshll.u32 %v2815_v16, 16 }
  0x75   : > { %v576_v40 = vshrl.u32 %v2766_v36, 16  ;;  %v572_v9 = vshll.u32 %v2766_v36, 16  ;;  %v2819_v8 = vcombine.low %v2761_v46, %v2766_v36 }
  0x76   : > { %1075 = vrot.lane.b32.xlu1 %v2589_v21, %s2234_s26  ;;  %v3035_v21 = vld [vmem:[%s2300_s24 + $0xb0] sm:$0x1] }
  0x77   : > { %v574_v53 = vrot.slane %v572_v9, 5  ;;  %v578_v57 = vrot.slane %v576_v40, 4  ;;  %3636 = vst [vmem:[#allocation14_spill] sm:$0xff] %v2819_v8  ;;  %v393_v9 = vor.u32 %v392_v0, %v389_v13  ;;  %v2833_v13 = vcombine.low %v2771_v18, %v2777_v22 }
  0x78   : > { %1059 = vrot.lane.b32.xlu0 %v2617_v35, %s2234_s26  ;;  %v563_v35 = vshrl.u32 %v2761_v46, 16 }
  0x79   : > { %v579_v2 = vor.u32 %v578_v57, %v574_v53  ;;  %v599_v57 = vor.u32 %v598_v34, %v594_v30  ;;  %3637 = vst [vmem:[#allocation15_spill] sm:$0xff] %v2833_v13  ;;  %v394_v0 = vrot.slane %v393_v9, 4  ;;  %v2853_v9 = vcombine.low %v2793_v19, %v2804_v31 }
  0x7a   : > { %1111 = vrot.lane.b32.xlu1 %v2604_v23, %s2233_s25  ;;  %v565_v45 = vrot.slane %v563_v35, 4  ;;  %v416_v35 = vshll.u32 %v2804_v31, 16 }
  0x7b   : > { %v580_v44 = vrot.slane %v579_v2, 4  ;;  %v600_v34 = vrot.slane %v599_v57, 4  ;;  %3639 = vst [vmem:[#allocation17_spill] sm:$0xff] %v2853_v9 }
  0x7c   : > { %1095 = vrot.lane.b32.xlu0 %v2613_v27, %s2233_s25  ;;  %v569_v5 = vor.u32 %v568_v26, %v565_v45  ;;  %v412_v45 = vrot.slane %v410_v52, 4  ;;  %v418_v49 = vrot.slane %v416_v35, 5  ;;  %v604_v35 = vrot.slane %v602_v58, 5 }
  0x7d   : > { %v585_v1 = vsel %vm2435_vm5, %v580_v44, %v584_v37  ;;  %v399_v37 = vsel %vm2435_vm5, %v394_v0, %v398_v28 }
  0x7e   : > { %1113 = vrot.lane.b32.xlu1 %v2621_v62, %s2233_s25  ;;  %v570_v40 = vrot.slane %v569_v5, 4  ;;  %v2837_v5 = vcombine.low %v2780_v43, %v2788_v42  ;;  %v413_v41 = vor.u32 %v412_v45, %v408_v15  ;;  %v605_v28 = vsel %vm2435_vm5, %v600_v34, %v604_v35 }
  0x7f   : > { %v745_v15 = vrot.slane %v2780_v43, 5  ;;  %v693_v43 = vrot.slane %v2793_v19, 5 }
  0x80   : > { %1097 = vrot.lane.b32.xlu0 %v2629_v24, %s2233_s25  ;;  %3638 = vst [vmem:[#allocation16_spill] sm:$0xff] %v2837_v5  ;;  %v575_v52 = vsel %vm2435_vm5, %v570_v40, %v574_v53  ;;  %v423_v24 = vor.u32 %v422_v11, %v418_v49  ;;  %v426_v53 = vshll.u32 %v2829_v59, 16  ;;  %v742_v40 = vrot.slane %v2766_v36, 5 }
  0x81   : > { %v2861_v60 = vcombine.low %v575_v52, %v585_v1  ;;  %v595_v36 = vsel %vm2435_vm5, %v590_v48, %v594_v30  ;;  %v414_v45 = vrot.slane %v413_v41, 4  ;;  %v690_v11 = vrot.slane %v2777_v22, 5 }
  0x82   : > { %1149 = vrot.lane.b32.xlu1 %v2663_v12, %s2236_s28  ;;  %v424_v57 = vrot.slane %v423_v24, 4  ;;  %v428_v58 = vrot.slane %v426_v53, 5  ;;  %v1962_v52 = vrot.slane %v2761_v46, 9  ;;  %v744_v1 = vrot.slane %v742_v40, 4 }
  0x83   : > { %v2878_v30 = vcombine.low %v399_v37, %v409_v54  ;;  %v2880_v63 = vcombine.low %v595_v36, %v605_v28  ;;  %v419_v24 = vsel %vm2435_vm5, %v414_v45, %v418_v49  ;;  %v1958_v46 = vrot.slane %v2771_v18, 9 }
  0x84   : > { %1133 = vrot.lane.b32.xlu0 %v2672_v14, %s2236_s28  ;;  %v429_v22 = vsel %vm2435_vm5, %v424_v57, %v428_v58  ;;  %v692_v48 = vrot.slane %v690_v11, 4  ;;  %v743_v34 = vsel %vm2374_vm2, %v1962_v52, %v742_v40  ;;  %v746_v35 = vsel %vm2374_vm2, %v744_v1, %v745_v15 }
  0x85   : > { %v748_v49 = vrot.slane %v2788_v42, 5  ;;  %v2899_v53 = vcombine.low %v419_v24, %v429_v22  ;;  %v2905_v18 = vcombine.low %v743_v34, %v746_v35  ;;  %v691_v19 = vsel %vm2374_vm2, %v1958_v46, %v690_v11  ;;  %v2988_v35 = vld [vmem:[%s2300_s24 + $0xa4] sm:$0xf] }
  0x86   : > { %1151 = vrot.lane.b32.xlu1 %v2684_v47, %s2236_s28  ;;  %v694_v40 = vsel %vm2374_vm2, %v692_v48, %v693_v43  ;;  %v696_v42 = vrot.slane %v2804_v31, 5  ;;  %v747_v54 = vrot.slane %v745_v15, 4  ;;  %v751_v45 = vrot.slane %v2815_v16, 5 }
  0x87   : > { %3640 = vst [vmem:[#allocation18_spill] sm:$0xff] %v2905_v18  ;;  %v750_v36 = vrot.slane %v748_v49, 4  ;;  %v2917_v57 = vcombine.low %v691_v19, %v694_v40  ;;  %v695_v58 = vrot.slane %v693_v43, 4  ;;  %v699_v52 = vrot.slane %v2829_v59, 5 }
  0x88   : > { %1135 = vrot.lane.b32.xlu0 %v2702_v17, %s2236_s28  ;;  %v698_v11 = vrot.slane %v696_v42, 4  ;;  %v749_v31 = vsel %vm2374_vm2, %v747_v54, %v748_v49  ;;  %v3000_v54 = vld [vmem:[%s2300_s24 + $0xa8] sm:$0xf] }
  0x89   : > { %v752_v16 = vsel %vm2374_vm2, %v750_v36, %v751_v45  ;;  %v697_v24 = vsel %vm2374_vm2, %v695_v58, %v696_v42  ;;  %v767_v42 = vshrl.u32 %v2988_v35, 16  ;;  %v763_v36 = vshll.u32 %v2988_v35, 16  ;;  %v2185_v45 = vld [vmem:[%s2300_s24 + $0x50] sm:$0xf]  ;;  %v2186_v58 = vld [vmem:[%s2300_s24 + $0x54] sm:$0xf] }
  0x8a   : > { %1187 = vrot.lane.b32.xlu1 %v2704_v6, %s2237_s29  ;;  %v2932_v15 = vcombine.low %v749_v31, %v752_v16  ;;  %v700_v59 = vsel %vm2374_vm2, %v698_v11, %v699_v52  ;;  %v3005_v11 = vcombine.low %v2185_v45, %v2186_v58  ;;  %v3010_v31 = vld [vmem:[%s2300_s24 + $0xac] sm:$0xf]  ;;  %v777_v16 = vshrl.u32 %v3000_v54, 16 }
  0x8b   : > { %v2942_v46 = vcombine.low %v697_v24, %v700_v59  ;;  %v773_v45 = vshll.u32 %v3000_v54, 16 }
  0x8c   : > { %1171 = vrot.lane.b32.xlu0 %v2714_v33, %s2237_s29  ;;  %v2825_v26 = vpop.permute.xlu1 %1107 }
  0x8d   : > { %v2845_v2 = vpop.permute.xlu0 %1091 }
  0x8e   : > { %1189 = vrot.lane.b32.xlu1 %v2727_v55, %s2237_s29 }
  0x90   : > { %1173 = vrot.lane.b32.xlu0 %v2735_v7, %s2237_s29  ;;  %v2857_v44 = vpop.permute.xlu1 %1109 }
  0x91   : > { %v2872_v0 = vpop.permute.xlu0 %1093 }
  0x92   : > { %1225 = vrot.lane.b32.xlu1 %v2819_v8, %s2238_s30 }
  0x94   : > { %1209 = vrot.lane.b32.xlu0 %v2833_v13, %s2238_s30 }
  0x96   : > { %1227 = vrot.lane.b32.xlu1 %v2837_v5, %s2238_s30 }
  0x97   : > { %v2890_v41 = vpop.permute.xlu1 %1069 }
  0x98   : > { %1211 = vrot.lane.b32.xlu0 %v2853_v9, %s2238_s30 }
  0x99   : > { %v2901_v37 = vpop.permute.xlu0 %1053 }
  0x9a   : > { %1263 = vrot.lane.b32.xlu1 %v2861_v60, %s2239_s8 }
  0x9b   : > { %v2913_v28 = vpop.permute.xlu1 %1071 }
  0x9c   : > { %1247 = vrot.lane.b32.xlu0 %v2878_v30, %s2239_s8 }
  0x9d   : > { %v2922_v1 = vpop.permute.xlu0 %1055 }
  0x9e   : > { %1265 = vrot.lane.b32.xlu1 %v2880_v63, %s2239_s8 }
  0xa0   : > { %1249 = vrot.lane.b32.xlu0 %v2899_v53, %s2239_s8 }
  0xa2   : > { %1301 = vrot.lane.b32.xlu1 %v2905_v18, %s2240_s9 }
  0xa3   : > { %v2938_v22 = vpop.permute.xlu1 %975 }
  0xa4   : > { %1285 = vrot.lane.b32.xlu0 %v2917_v57, %s2240_s9 }
  0xa6   : > { %997 = vrot.lane.b32.xlu1 %v2663_v12, %s2235_s27 }
  0xa7   : > { %v2944_v48 = vpop.permute.xlu0 %973 }
  0xa8   : > { %981 = vrot.lane.b32.xlu0 %v2672_v14, %s2235_s27 }
  0xaa   : > { %1303 = vrot.lane.b32.xlu1 %v2932_v15, %s2240_s9  ;;  %v2948_v12 = vpop.permute.xlu1 %991 }
  0xac   : > { %1287 = vrot.lane.b32.xlu0 %v2942_v46, %s2240_s9 }
  0xae   : > { %999 = vrot.lane.b32.xlu1 %v2684_v47, %s2235_s27 }
  0xaf   : > { %v990_v43 = vpop.permute.xlu0 %989 }
  0xb0   : > { %983 = vrot.lane.b32.xlu0 %v2702_v17, %s2235_s27  ;;  %v1340_v62 = vsel %vm1313_vm7, %v3005_v11, %v990_v43  ;;  %v779_v43 = vrot.slane %v777_v16, 4 }
  0xb1   : > { %v2958_v14 = vpop.permute.xlu1 %1145  ;;  %v1380_v38 = vsel %vm1362_vm8, %v1340_v62, %v2890_v41  ;;  %v793_v62 = vshll.u32 %v3035_v21, 16 }
  0xb2   : > { %1077 = vrot.lane.b32.xlu1 %v2704_v6, %s2234_s26 }
  0xb3   : > { %v2962_v34 = vpop.permute.xlu0 %1129 }
  0xb4   : > { %1061 = vrot.lane.b32.xlu0 %v2714_v33, %s2234_s26 }
  0xb6   : > { %1079 = vrot.lane.b32.xlu1 %v2727_v55, %s2234_s26  ;;  %v2983_v55 = vld [vmem:[%s2300_s24 + $0xa0] sm:$0xf] }
  0xb7   : > { %v754_v49 = vshrl.u32 %v2983_v55, 16  ;;  %v757_v19 = vshll.u32 %v2983_v55, 16 }
  0xb8   : > { %v2966_v47 = vpop.permute.xlu1 %1147  ;;  %1063 = vrot.lane.b32.xlu0 %v2735_v7, %s2234_s26 }
  0xb9   : > { %v756_v24 = vrot.slane %v754_v49, 4  ;;  %v759_v59 = vrot.slane %v757_v19, 5  ;;  %v2187_v49 = vld [vmem:[%s2300_s24] sm:$0xf]  ;;  %v2188_v19 = vld [vmem:[%s2300_s24 + $0x4] sm:$0xf] }
  0xba   : > { %1115 = vrot.lane.b32.xlu1 %v2819_v8, %s2233_s25  ;;  %v2972_v17 = vpop.permute.xlu0 %1131  ;;  %v783_v8 = vshll.u32 %v3010_v31, 16  ;;  %v1965_v23 = vcombine.low %v2187_v49, %v2188_v19 }
  0xbc   : > { %v2974_v6 = vpop.permute.xlu1 %1183  ;;  %1099 = vrot.lane.b32.xlu0 %v2833_v13, %s2233_s25  ;;  %v769_v13 = vrot.slane %v767_v42, 4  ;;  %v760_v42 = vor.u32 %v759_v59, %v756_v24  ;;  %v3042_v19 = vrot.slane %v783_v8, 5  ;;  %v1316_v16 = vsel %vm1313_vm7, %v1965_v23, %v2944_v48 }
  0xbd   : > { %v1413_v8 = vsel %vm1395_vm9, %v1380_v38, %v2825_v26  ;;  %v1364_v41 = vsel %vm1362_vm8, %v1316_v16, %v2901_v37  ;;  %v3068_v26 = vcombine.low %v3000_v54, %v3010_v31  ;;  %v795_v48 = vrot.slane %v793_v62, 5 }
  0xbe   : > { %1117 = vrot.lane.b32.xlu1 %v2837_v5, %s2233_s25  ;;  %v2980_v33 = vpop.permute.xlu0 %1167  ;;  %v3021_v5 = vrot.slane %v763_v36, 5  ;;  %v775_v36 = vrot.slane %v773_v45, 5  ;;  %v761_v20 = vrot.slane %v760_v42, 4 }
  0xc0   : > { %v2985_v7 = vpop.permute.xlu1 %1185  ;;  %1101 = vrot.lane.b32.xlu0 %v2853_v9, %s2233_s25  ;;  %v787_v9 = vshrl.u32 %v3010_v31, 16  ;;  %v770_v49 = vor.u32 %v769_v13, %v3021_v5  ;;  %v780_v25 = vor.u32 %v779_v43, %v775_v36  ;;  %v1397_v43 = vsel %vm1395_vm9, %v1364_v41, %v2845_v2 }
  0xc2   : > { %1153 = vrot.lane.b32.xlu1 %v2861_v60, %s2236_s28  ;;  %v2996_v40 = vpop.permute.xlu0 %1169  ;;  %v789_v51 = vrot.slane %v787_v9, 4  ;;  %v771_v13 = vrot.slane %v770_v49, 4  ;;  %v781_v42 = vrot.slane %v780_v25, 4 }
  0xc4   : > { %v3007_v52 = vpop.permute.xlu1 %1221  ;;  %1137 = vrot.lane.b32.xlu0 %v2878_v30, %s2236_s28  ;;  %v790_v9 = vor.u32 %v789_v51, %v3042_v19  ;;  %v804_v51 = vrot.slane %v2988_v35, 5 }
  0xc6   : > { %1155 = vrot.lane.b32.xlu1 %v2880_v63, %s2236_s28  ;;  %v3018_v58 = vpop.permute.xlu0 %1205  ;;  %v791_v16 = vrot.slane %v790_v9, 4  ;;  %v806_v25 = vrot.slane %v804_v51, 4 }
  0xc8   : > { %v3026_v27 = vpop.permute.xlu1 %1223  ;;  %1139 = vrot.lane.b32.xlu0 %v2899_v53, %s2236_s28 }
  0xca   : > { %1191 = vrot.lane.b32.xlu1 %v2905_v18, %s2237_s29  ;;  %v3039_v3 = vpop.permute.xlu0 %1207  ;;  %v2192_v18 = vld [vmem:[%s2300_s24 + $0x5c] sm:$0xf] }
  0xcb   : > { %v3048_v24 = vcombine.low %v2191_v4, %v2192_v18  ;;  %v3061_v4 = vcombine.low %v2983_v55, %v2988_v35  ;;  %v1446_v18 = vsel %vm1428_vm10, %v1413_v8, %v2958_v14  ;;  %v766_v14 = vsel %vm2435_vm5, %v761_v20, %v3021_v5 }
  0xcc   : > { %v1260_v59 = vpop.permute.xlu1 %1259  ;;  %1175 = vrot.lane.b32.xlu0 %v2917_v57, %s2237_s29  ;;  %v1479_v45 = vsel %vm1461_vm11, %v1446_v18, %v2974_v6  ;;  %v1430_v6 = vsel %vm1428_vm10, %v1397_v43, %v2962_v34  ;;  %v1319_v5 = vsel %vm1313_vm7, %v1966_v10, %v2938_v22  ;;  %v807_v22 = vrot.slane %v3000_v54, 5 }
  0xcd   : > { %v1343_v37 = vsel %vm1313_vm7, %v3048_v24, %v2948_v12  ;;  %v1512_v35 = vsel %vm1494_vm12, %v1479_v45, %v3007_v52  ;;  %v776_v12 = vsel %vm2435_vm5, %v771_v13, %v775_v36  ;;  %v1463_v52 = vsel %vm1461_vm11, %v1430_v6, %v2980_v33 }
  0xce   : > { %1193 = vrot.lane.b32.xlu1 %v2932_v15, %s2237_s29  ;;  %v1244_v23 = vpop.permute.xlu0 %1243  ;;  %v1545_v62 = vsel %vm1527_vm13, %v1512_v35, %v1260_v59  ;;  %v1382_v2 = vsel %vm1362_vm8, %v1343_v37, %v2913_v28  ;;  %v1496_v34 = vsel %vm1494_vm12, %v1463_v52, %v3018_v58  ;;  %v3108_v10 = vcombine.low %v766_v14, %v776_v12 }
  0xcf   : > { %v1963_v28 = vrot.slane %v2983_v55, 9  ;;  %v1529_v33 = vsel %vm1527_vm13, %v1496_v34, %v1244_v23  ;;  %v786_v20 = vsel %vm2435_vm5, %v781_v42, %v3042_v19  ;;  %v796_v58 = vsel %vm2435_vm5, %v791_v16, %v795_v48 }
  0xd0   : > { %v1262_v38 = vpop.permute.xlu1 %1261  ;;  %1177 = vrot.lane.b32.xlu0 %v2942_v46, %s2237_s29  ;;  %v1366_v13 = vsel %vm1362_vm8, %v1319_v5, %v2922_v1  ;;  %v1415_v9 = vsel %vm1395_vm9, %v1382_v2, %v2857_v44  ;;  %v3134_v1 = vcombine.low %v786_v20, %v796_v58  ;;  %v808_v48 = vsel %vm2374_vm2, %v806_v25, %v807_v22 }
  0xd1   : > { %v1448_v23 = vsel %vm1428_vm10, %v1415_v9, %v2966_v47  ;;  %v805_v44 = vsel %vm2374_vm2, %v1963_v28, %v804_v51  ;;  %v1399_v41 = vsel %vm1395_vm9, %v1366_v13, %v2872_v0  ;;  %v809_v42 = vrot.slane %v807_v22, 4 }
  0xd2   : > { %1229 = vrot.lane.b32.xlu1 %v3061_v4, %s2238_s30  ;;  %v1246_v49 = vpop.permute.xlu0 %1245  ;;  %v1481_v19 = vsel %vm1461_vm11, %v1448_v23, %v2985_v7  ;;  %v810_v7 = vrot.slane %v3010_v31, 5  ;;  %v1432_v37 = vsel %vm1428_vm10, %v1399_v41, %v2972_v17  ;;  %v3160_v17 = vcombine.low %v805_v44, %v808_v48 }
  0xd3   : > { %v1514_v47 = vsel %vm1494_vm12, %v1481_v19, %v3026_v27  ;;  %v1465_v51 = vsel %vm1461_vm11, %v1432_v37, %v2996_v40  ;;  %v813_v43 = vrot.slane %v3035_v21, 5 }
  0xd4   : > { %v1298_v8 = vpop.permute.xlu1 %1297  ;;  %1213 = vrot.lane.b32.xlu0 %v3005_v11, %s2238_s30  ;;  %v1547_v45 = vsel %vm1527_vm13, %v1514_v47, %v1262_v38  ;;  %v1498_v0 = vsel %vm1494_vm12, %v1465_v51, %v3039_v3  ;;  %v812_v40 = vrot.slane %v810_v7, 4 }
  0xd5   : > { %v1578_v36 = vsel %vm1560_vm14, %v1545_v62, %v1298_v8  ;;  %v1531_v31 = vsel %vm1527_vm13, %v1498_v0, %v1246_v49  ;;  %v811_v49 = vsel %vm2374_vm2, %v809_v42, %v810_v7 }
  0xd6   : > { %1231 = vrot.lane.b32.xlu1 %v3068_v26, %s2238_s30  ;;  %2089 = vmatprep.mubr.msk.bf16.mxu1 %vm1620_vm15, %v1578_v36  ;;  %v1282_v59 = vpop.permute.xlu0 %1281  ;;  %v814_v21 = vsel %vm2374_vm2, %v812_v40, %v813_v43 }
  0xd7   : > { %v1562_v55 = vsel %vm1560_vm14, %v1529_v33, %v1282_v59  ;;  %v3184_v6 = vcombine.low %v811_v49, %v814_v21 }
  0xd8   : > { %v3123_v54 = vpop.permute.xlu1 %993  ;;  %1215 = vrot.lane.b32.xlu0 %v3048_v24, %s2238_s30  ;;  %2073 = vmatprep.mubr.msk.bf16.mxu0 %vm1620_vm15, %v1562_v55 }
  0xda   : > { %1267 = vrot.lane.b32.xlu1 %v3108_v10, %s2239_s8  ;;  %v3142_v18 = vpop.permute.xlu0 %977 }
  0xdc   : > { %v1300_v14 = vpop.permute.xlu1 %1299  ;;  %1251 = vrot.lane.b32.xlu0 %v2498_v39, %s2239_s8 }
  0xdd   : > { %v1580_v27 = vsel %vm1560_vm14, %v1547_v45, %v1300_v14 }
  0xde   : > { %1269 = vrot.lane.b32.xlu1 %v3134_v1, %s2239_s8  ;;  %2090 = vmatmul.mubr.msk.bf16.vlgmr.msra.gmra.mrb[0].mxu1 %vm1620_vm15, %v1580_v27  ;;  %v1284_v38 = vpop.permute.xlu0 %1283 }
  0xdf   : > { %v1564_v35 = vsel %vm1560_vm14, %v1531_v31, %v1284_v38 }
  0xe0   : > { %v3165_v12 = vpop.permute.xlu1 %995  ;;  %1253 = vrot.lane.b32.xlu0 %v2473_v61, %s2239_s8  ;;  %2074 = vmatmul.mubr.msk.bf16.vlgmr.msra.gmra.mrb[0].mxu0 %vm1620_vm15, %v1564_v35 }
  0xe2   : > { %1305 = vrot.lane.b32.xlu1 %v3160_v17, %s2240_s9  ;;  %v3172_v3 = vpop.permute.xlu0 %979 }
  0xe4   : > { %v3178_v16 = vpop.permute.xlu1 %1073  ;;  %1289 = vrot.lane.b32.xlu0 %v2410_v56, %s2240_s9 }
  0xe6   : > { %1001 = vrot.lane.b32.xlu1 %v2861_v60, %s2235_s27  ;;  %v3186_v62 = vpop.permute.xlu0 %1057 }
  0xe8   : > { %v3188_v8 = vpop.permute.xlu1 %1075  ;;  %985 = vrot.lane.b32.xlu0 %v2878_v30, %s2235_s27  ;;  %v3641_v30 = vld [vmem:[#allocation18_spill] sm:$0xff] }
  0xea   : > { %1307 = vrot.lane.b32.xlu1 %v3184_v6, %s2240_s9  ;;  %v3194_v5 = vpop.permute.xlu0 %1059 }
  0xec   : > { %v3196_v2 = vpop.permute.xlu1 %1111  ;;  %1291 = vrot.lane.b32.xlu0 %v2423_v32, %s2240_s9 }
  0xee   : > { %1003 = vrot.lane.b32.xlu1 %v2880_v63, %s2235_s27  ;;  %v3202_v60 = vpop.permute.xlu0 %1095 }
  0xf0   : > { %v3204_v52 = vpop.permute.xlu1 %1113  ;;  %987 = vrot.lane.b32.xlu0 %v2899_v53, %s2235_s27 }
  0xf2   : > { %1081 = vrot.lane.b32.xlu1 %v3641_v30, %s2234_s26  ;;  %v3210_v36 = vpop.permute.xlu0 %1097 }
  0xf4   : > { %v3212_v34 = vpop.permute.xlu1 %1149  ;;  %1065 = vrot.lane.b32.xlu0 %v2917_v57, %s2234_s26  ;;  %v3231_v57 = vld [vmem:[%s2300_s24 + $0xb4] sm:$0xf] }
  0xf6   : > { %1083 = vrot.lane.b32.xlu1 %v2932_v15, %s2234_s26  ;;  %v3218_v63 = vpop.permute.xlu0 %1133  ;;  %v3236_v15 = vld [vmem:[%s2300_s24 + $0xb8] sm:$0xf] }
  0xf7   : > { %v829_v20 = vshrl.u32 %v3236_v15, 16  ;;  %v825_v58 = vshll.u32 %v3236_v15, 16 }
  0xf8   : > { %v3220_v28 = vpop.permute.xlu1 %1151  ;;  %1067 = vrot.lane.b32.xlu0 %v2942_v46, %s2234_s26  ;;  %v816_v46 = vshrl.u32 %v3231_v57, 16 }
  0xf9   : > { %v827_v19 = vrot.slane %v825_v58, 5  ;;  %v831_v44 = vrot.slane %v829_v20, 4 }
  0xfa   : > { %1119 = vrot.lane.b32.xlu1 %v3061_v4, %s2233_s25  ;;  %v3226_v53 = vpop.permute.xlu0 %1135  ;;  %v819_v4 = vshll.u32 %v3231_v57, 16  ;;  %v818_v13 = vrot.slane %v816_v46, 4 }
  0xfb   : > { %v832_v37 = vor.u32 %v831_v44, %v827_v19 }
  0xfc   : > { %v3228_v22 = vpop.permute.xlu1 %1187  ;;  %1103 = vrot.lane.b32.xlu0 %v3005_v11, %s2233_s25  ;;  %v3251_v11 = vld [vmem:[%s2300_s24 + $0xbc] sm:$0xf]  ;;  %v821_v9 = vrot.slane %v819_v4, 5 }
  0xfd   : > { %v839_v23 = vshrl.u32 %v3251_v11, 16  ;;  %v835_v41 = vshll.u32 %v3251_v11, 16  ;;  %v833_v38 = vrot.slane %v832_v37, 4 }
  0xfe   : > { %1121 = vrot.lane.b32.xlu1 %v3068_v26, %s2233_s25  ;;  %v3240_v33 = vpop.permute.xlu0 %1171  ;;  %v3256_v26 = vld [vmem:[%s2300_s24 + $0xc0] sm:$0xf]  ;;  %v822_v7 = vor.u32 %v821_v9, %v818_v13 }
  0xff   : > { %v837_v45 = vrot.slane %v835_v41, 5  ;;  %v841_v14 = vrot.slane %v839_v23, 4  ;;  %v2020_v23 = vcombine.low %v3251_v11, %v3256_v26 }
 0x100   : > { %v3244_v59 = vpop.permute.xlu1 %1189  ;;  %1105 = vrot.lane.b32.xlu0 %v3048_v24, %s2233_s25  ;;  %v849_v24 = vshrl.u32 %v3256_v26, 16  ;;  %v823_v31 = vrot.slane %v822_v7, 4 }
 0x101   : > { %v842_v42 = vor.u32 %v841_v14, %v837_v45 }
 0x102   : > { %1157 = vrot.lane.b32.xlu1 %v3108_v10, %s2236_s28  ;;  %v3258_v25 = vpop.permute.xlu0 %1173  ;;  %v845_v10 = vshll.u32 %v3256_v26, 16  ;;  %v851_v27 = vrot.slane %v849_v24, 4  ;;  %v828_v46 = vsel %vm2435_vm5, %v823_v31, %v827_v19  ;;  %v3645_v31 = vld [vmem:[#allocation5_spill] sm:$0xff] }
 0x103   : > { %v843_v4 = vrot.slane %v842_v42, 4 }
 0x104   : > { %v1226_v55 = vpop.permute.xlu1 %1225  ;;  %1141 = vrot.lane.b32.xlu0 %v2498_v39, %s2236_s28  ;;  %v847_v51 = vrot.slane %v845_v10, 5  ;;  %v3275_v39 = vld [vmem:[%s2300_s24 + $0xc4] sm:$0x1] }
 0x105   : > { %v855_v43 = vshll.u32 %v3275_v39, 16 }
 0x106   : > { %1159 = vrot.lane.b32.xlu1 %v3134_v1, %s2236_s28  ;;  %v1210_v47 = vpop.permute.xlu0 %1209  ;;  %v852_v40 = vor.u32 %v851_v27, %v847_v51  ;;  %v848_v24 = vsel %vm2435_vm5, %v843_v4, %v847_v51  ;;  %v3647_v4 = vld [vmem:[#allocation7_spill] sm:$0xff] }
 0x108   : > { %v3268_v48 = vpop.permute.xlu1 %1227  ;;  %1143 = vrot.lane.b32.xlu0 %v2473_v61, %s2236_s28  ;;  %v3642_v61 = vld [vmem:[#allocation2_spill] sm:$0xff]  ;;  %s3484_s28 = scalar_lea.vmem %s3600_s3, %s1951_s23 }
 0x109   : > { %v1346_v35 = vsel %vm1313_vm7, %v3642_v61, %v3123_v54  ;;  %v838_v54 = vsel %vm2435_vm5, %v833_v38, %v837_v45  ;;  %v869_v45 = vrot.slane %v3251_v11, 5  ;;  %v1325_v11 = vsel %vm1313_vm7, %v3645_v31, %v3172_v3 }
 0x10a   : > { %1195 = vrot.lane.b32.xlu1 %v3160_v17, %s2237_s29  ;;  %v3277_v0 = vpop.permute.xlu0 %1211  ;;  %v2019_v17 = vcombine.low %v3231_v57, %v3236_v15  ;;  %v1384_v49 = vsel %vm1362_vm8, %v1346_v35, %v3178_v16  ;;  %v853_v16 = vrot.slane %v852_v40, 4  ;;  %v875_v35 = vrot.slane %v3275_v39, 5 }
 0x10c   : > { %v1264_v1 = vpop.permute.xlu1 %1263  ;;  %1179 = vrot.lane.b32.xlu0 %v2410_v56, %s2237_s29  ;;  %v1417_v56 = vsel %vm1395_vm9, %v1384_v49, %v3196_v2  ;;  %v857_v2 = vrot.slane %v855_v43, 5 }
 0x10d   : > { %v1450_v58 = vsel %vm1428_vm10, %v1417_v56, %v3212_v34 }
 0x10e   : > { %1197 = vrot.lane.b32.xlu1 %v3184_v6, %s2237_s29  ;;  %v1248_v21 = vpop.permute.xlu0 %1247  ;;  %v3643_v6 = vld [vmem:[#allocation3_spill] sm:$0xff]  ;;  %v1483_v9 = vsel %vm1461_vm11, %v1450_v58, %v3228_v22  ;;  %v2021_v22 = vcombine.low %v828_v46, %v838_v54  ;;  %v3648_v58 = vld [vmem:[#allocation8_spill] sm:$0xff] }
 0x10f   : > { %v1322_v20 = vsel %vm1313_vm7, %v3643_v6, %v3142_v18  ;;  %v866_v18 = vrot.slane %v3236_v15, 5  ;;  %v858_v15 = vsel %vm2435_vm5, %v853_v16, %v857_v2  ;;  %v3649_v2 = vld [vmem:[#allocation9_spill] sm:$0xff] }
 0x110   : > { %v1266_v30 = vpop.permute.xlu1 %1265  ;;  %1181 = vrot.lane.b32.xlu0 %v2423_v32, %s2237_s29  ;;  %v1368_v13 = vsel %vm1362_vm8, %v1322_v20, %v3186_v62  ;;  %v1516_v32 = vsel %vm1494_vm12, %v1483_v9, %v1226_v55  ;;  %v3644_v55 = vld [vmem:[#allocation4_spill] sm:$0xff] }
 0x111   : > { %v1401_v34 = vsel %vm1395_vm9, %v1368_v13, %v3202_v60  ;;  %v1549_v62 = vsel %vm1527_vm13, %v1516_v32, %v1264_v1  ;;  %v1349_v7 = vsel %vm1313_vm7, %v3644_v55, %v3165_v12  ;;  %v2022_v1 = vcombine.low %v848_v24, %v858_v15 }
 0x112   : > { %1233 = vrot.lane.b32.xlu1 %v2019_v17, %s2238_s30  ;;  %v1250_v19 = vpop.permute.xlu0 %1249  ;;  %v1434_v44 = vsel %vm1428_vm10, %v1401_v34, %v3218_v63  ;;  %v1964_v63 = vrot.slane %v3231_v57, 9  ;;  %v1386_v14 = vsel %vm1362_vm8, %v1349_v7, %v3188_v8  ;;  %v872_v57 = vrot.slane %v3256_v26, 5 }
 0x113   : > { %v1467_v10 = vsel %vm1461_vm11, %v1434_v44, %v3240_v33  ;;  %v868_v33 = vrot.slane %v866_v18, 4  ;;  %v1419_v12 = vsel %vm1395_vm9, %v1386_v14, %v3204_v52  ;;  %v1370_v26 = vsel %vm1362_vm8, %v1325_v11, %v3194_v5 }
 0x114   : > { %v1302_v41 = vpop.permute.xlu1 %1301  ;;  %1217 = vrot.lane.b32.xlu0 %v3642_v61, %s2238_s30  ;;  %v1500_v37 = vsel %vm1494_vm12, %v1467_v10, %v1210_v47  ;;  %v1452_v8 = vsel %vm1428_vm10, %v1419_v12, %v3220_v28  ;;  %v867_v52 = vsel %vm2374_vm2, %v1964_v63, %v866_v18  ;;  %v871_v28 = vrot.slane %v869_v45, 4 }
 0x115   : > { %v1582_v60 = vsel %vm1560_vm14, %v1549_v62, %v1302_v41  ;;  %v1533_v50 = vsel %vm1527_vm13, %v1500_v37, %v1248_v21  ;;  %v1485_v38 = vsel %vm1461_vm11, %v1452_v8, %v3244_v59  ;;  %v870_v3 = vsel %vm2374_vm2, %v868_v33, %v869_v45  ;;  %v3646_v21 = vld [vmem:[#allocation6_spill] sm:$0xff] }
 0x116   : > { %1235 = vrot.lane.b32.xlu1 %v2020_v23, %s2238_s30  ;;  %2093 = vmatprep.mubr.msk.bf16.mxu1 %vm1620_vm15, %v1582_v60  ;;  %v1286_v51 = vpop.permute.xlu0 %1285  ;;  %v1403_v42 = vsel %vm1395_vm9, %v1370_v26, %v3210_v36  ;;  %v1518_v40 = vsel %vm1494_vm12, %v1485_v38, %v3268_v48  ;;  %v874_v61 = vrot.slane %v872_v57, 4  ;;  %v2023_v39 = vcombine.low %v867_v52, %v870_v3  ;;  %v3650_v37 = vld [vmem:[#allocation10_spill] sm:$0xff] }
 0x117   : > { %v1566_v47 = vsel %vm1560_vm14, %v1533_v50, %v1286_v51  ;;  %v1436_v5 = vsel %vm1428_vm10, %v1403_v42, %v3226_v53  ;;  %v1551_v59 = vsel %vm1527_vm13, %v1518_v40, %v1266_v30  ;;  %v873_v30 = vsel %vm2374_vm2, %v871_v28, %v872_v57  ;;  %v3651_v57 = vld [vmem:[#allocation11_spill] sm:$0xff]  ;;  %v3652_v42 = vld [vmem:[#allocation12_spill] sm:$0xff] }
 0x118   : > { %v3342_v27 = vpop.permute.xlu1 %997  ;;  %1219 = vrot.lane.b32.xlu0 %v3644_v55, %s2238_s30  ;;  %2077 = vmatprep.mubr.msk.bf16.mxu0 %vm1620_vm15, %v1566_v47  ;;  %v1469_v49 = vsel %vm1461_vm11, %v1436_v5, %v3258_v25  ;;  %v876_v25 = vsel %vm2374_vm2, %v874_v61, %v875_v35 }
 0x119   : > { %v1502_v48 = vsel %vm1494_vm12, %v1469_v49, %v3277_v0  ;;  %v2024_v0 = vcombine.low %v873_v30, %v876_v25  ;;  %v1352_v33 = vsel %vm1313_vm7, %v3650_v37, %v3342_v27 }
 0x11a   : > { %1271 = vrot.lane.b32.xlu1 %v2021_v22, %s2239_s8  ;;  %v982_v43 = vpop.permute.xlu0 %981  ;;  %v1535_v53 = vsel %vm1527_vm13, %v1502_v48, %v1250_v19 }
 0x11b   : > { %v1328_v12 = vsel %vm1313_vm7, %v3651_v57, %v982_v43 }
 0x11c   : > { %v1304_v17 = vpop.permute.xlu1 %1303  ;;  %1255 = vrot.lane.b32.xlu0 %v3646_v21, %s2239_s8  ;;  %v3653_v21 = vld [vmem:[#allocation13_spill] sm:$0xff] }
 0x11d   : > { %v1584_v36 = vsel %vm1560_vm14, %v1551_v59, %v1304_v17 }
 0x11e   : > { %1273 = vrot.lane.b32.xlu1 %v2022_v1, %s2239_s8  ;;  %2094 = vmatmul.mubr.msk.bf16.gmra.mrb[4].mxu1 %vm1620_vm15, %v1584_v36  ;;  %v1288_v56 = vpop.permute.xlu0 %1287 }
 0x11f   : > { %v1568_v46 = vsel %vm1560_vm14, %v1535_v53, %v1288_v56 }
 0x120   : > { %v1000_v54 = vpop.permute.xlu1 %999  ;;  %1257 = vrot.lane.b32.xlu0 %v3647_v4, %s2239_s8  ;;  %2078 = vmatmul.mubr.msk.bf16.gmra.mrb[4].mxu0 %vm1620_vm15, %v1568_v46 }
 0x121   : > { %v1355_v40 = vsel %vm1313_vm7, %v3652_v42, %v1000_v54 }
 0x122   : > { %1309 = vrot.lane.b32.xlu1 %v2023_v39, %s2240_s9  ;;  %v984_v6 = vpop.permute.xlu0 %983 }
 0x123   : > { %v1331_v36 = vsel %vm1313_vm7, %v3653_v21, %v984_v6 }
 0x124   : > { %v1078_v20 = vpop.permute.xlu1 %1077  ;;  %1293 = vrot.lane.b32.xlu0 %v3648_v58, %s2240_s9 }
 0x125   : > { %v1388_v45 = vsel %vm1362_vm8, %v1352_v33, %v1078_v20 }
 0x126   : > { %1311 = vrot.lane.b32.xlu1 %v2024_v0, %s2240_s9  ;;  %v1062_v29 = vpop.permute.xlu0 %1061 }
 0x127   : > { %v1372_v1 = vsel %vm1362_vm8, %v1328_v12, %v1062_v29 }
 0x128   : > { %v1080_v16 = vpop.permute.xlu1 %1079  ;;  %1295 = vrot.lane.b32.xlu0 %v3649_v2, %s2240_s9 }
 0x129   : > { %v1390_v61 = vsel %vm1362_vm8, %v1355_v40, %v1080_v16 }
 0x12a   : > { %v1064_v13 = vpop.permute.xlu0 %1063 }
 0x12b   : > { %v1374_v39 = vsel %vm1362_vm8, %v1331_v36, %v1064_v13 }
 0x12c   : > { %v1116_v9 = vpop.permute.xlu1 %1115 }
 0x12d   : > { %v1421_v50 = vsel %vm1395_vm9, %v1388_v45, %v1116_v9 }
 0x12e   : > { %v1100_v23 = vpop.permute.xlu0 %1099 }
 0x12f   : > { %v1405_v11 = vsel %vm1395_vm9, %v1372_v1, %v1100_v23 }
 0x130   : > { %v1118_v18 = vpop.permute.xlu1 %1117 }
 0x131   : > { %v1423_v59 = vsel %vm1395_vm9, %v1390_v61, %v1118_v18 }
 0x132   : > { %v1102_v34 = vpop.permute.xlu0 %1101 }
 0x133   : > { %v1407_v56 = vsel %vm1395_vm9, %v1374_v39, %v1102_v34 }
 0x134   : > { %v1154_v32 = vpop.permute.xlu1 %1153 }
 0x135   : > { %v1454_v47 = vsel %vm1428_vm10, %v1421_v50, %v1154_v32  ;;  %v3654_v50 = vld [vmem:[#allocation14_spill] sm:$0xff] }
 0x136   : > { %v1138_v19 = vpop.permute.xlu0 %1137 }
 0x137   : > { %v1438_v52 = vsel %vm1428_vm10, %v1405_v11, %v1138_v19 }
 0x138   : > { %v1156_v44 = vpop.permute.xlu1 %1155 }
 0x139   : > { %v1456_v48 = vsel %vm1428_vm10, %v1423_v59, %v1156_v44  ;;  %v3657_v59 = vld [vmem:[#allocation17_spill] sm:$0xff] }
 0x13a   : > { %v1140_v62 = vpop.permute.xlu0 %1139 }
 0x13b   : > { %v1440_v46 = vsel %vm1428_vm10, %v1407_v56, %v1140_v62 }
 0x13c   : > { %v1192_v41 = vpop.permute.xlu1 %1191 }
 0x13d   : > { %v1487_v31 = vsel %vm1461_vm11, %v1454_v47, %v1192_v41 }
 0x13e   : > { %v1176_v22 = vpop.permute.xlu0 %1175 }
 0x13f   : > { %v1471_v3 = vsel %vm1461_vm11, %v1438_v52, %v1176_v22 }
 0x140   : > { %v1194_v24 = vpop.permute.xlu1 %1193 }
 0x141   : > { %v1489_v53 = vsel %vm1461_vm11, %v1456_v48, %v1194_v24 }
 0x142   : > { %v1178_v10 = vpop.permute.xlu0 %1177 }
 0x143   : > { %v1473_v0 = vsel %vm1461_vm11, %v1440_v46, %v1178_v10 }
 0x144   : > { %v1230_v60 = vpop.permute.xlu1 %1229 }
 0x145   : > { %v1520_v8 = vsel %vm1494_vm12, %v1487_v31, %v1230_v60  ;;  %v3655_v31 = vld [vmem:[#allocation15_spill] sm:$0xff] }
 0x146   : > { %v1214_v15 = vpop.permute.xlu0 %1213 }
 0x147   : > { %v1504_v43 = vsel %vm1494_vm12, %v1471_v3, %v1214_v15 }
 0x148   : > { %v1232_v63 = vpop.permute.xlu1 %1231 }
 0x149   : > { %v1522_v30 = vsel %vm1494_vm12, %v1489_v53, %v1232_v63 }
 0x14a   : > { %v1216_v55 = vpop.permute.xlu0 %1215 }
 0x14b   : > { %v1506_v20 = vsel %vm1494_vm12, %v1473_v0, %v1216_v55 }
 0x14c   : > { %v1268_v7 = vpop.permute.xlu1 %1267 }
 0x14d   : > { %v1553_v26 = vsel %vm1527_vm13, %v1520_v8, %v1268_v7 }
 0x14e   : > { %v1252_v14 = vpop.permute.xlu0 %1251 }
 0x14f   : > { %v1537_v35 = vsel %vm1527_vm13, %v1504_v43, %v1252_v14 }
 0x150   : > { %v1270_v51 = vpop.permute.xlu1 %1269 }
 0x151   : > { %v1555_v54 = vsel %vm1527_vm13, %v1522_v30, %v1270_v51 }
 0x152   : > { %v1254_v27 = vpop.permute.xlu0 %1253 }
 0x153   : > { %v1539_v58 = vsel %vm1527_vm13, %v1506_v20, %v1254_v27  ;;  %v3656_v27 = vld [vmem:[#allocation16_spill] sm:$0xff] }
 0x154   : > { %v1306_v38 = vpop.permute.xlu1 %1305 }
 0x155   : > { %v1586_v28 = vsel %vm1560_vm14, %v1553_v26, %v1306_v38 }
 0x156   : > { %2097 = vmatprep.mubr.msk.bf16.mxu1 %vm1620_vm15, %v1586_v28  ;;  %v1290_v5 = vpop.permute.xlu0 %1289 }
 0x157   : > { %v1570_v17 = vsel %vm1560_vm14, %v1537_v35, %v1290_v5 }
 0x158   : > { %v1002_v49 = vpop.permute.xlu1 %1001  ;;  %2081 = vmatprep.mubr.msk.bf16.mxu0 %vm1620_vm15, %v1570_v17 }
 0x159   : > { %v1358_v51 = vsel %vm1313_vm7, %v3654_v50, %v1002_v49 }
 0x15a   : > { %v986_v25 = vpop.permute.xlu0 %985 }
 0x15b   : > { %v1334_v11 = vsel %vm1313_vm7, %v3655_v31, %v986_v25 }
 0x15c   : > { %v1308_v4 = vpop.permute.xlu1 %1307 }
 0x15d   : > { %v1588_v6 = vsel %vm1560_vm14, %v1555_v54, %v1308_v4 }
 0x15e   : > { %2098 = vmatmul.mubr.msk.bf16.gmra.mrb[8].mxu1 %vm1620_vm15, %v1588_v6  ;;  %v1292_v29 = vpop.permute.xlu0 %1291 }
 0x15f   : > { %v1572_v16 = vsel %vm1560_vm14, %v1539_v58, %v1292_v29 }
 0x160   : > { %v1004_v2 = vpop.permute.xlu1 %1003  ;;  %2082 = vmatmul.mubr.msk.bf16.gmra.mrb[8].mxu0 %vm1620_vm15, %v1572_v16 }
 0x161   : > { %v1361_v52 = vsel %vm1313_vm7, %v3656_v27, %v1004_v2 }
 0x162   : > { %v988_v13 = vpop.permute.xlu0 %987 }
 0x163   : > { %v1337_v17 = vsel %vm1313_vm7, %v3657_v59, %v988_v13 }
 0x164   : > { %v1082_v9 = vpop.permute.xlu1 %1081 }
 0x165   : > { %v1392_v57 = vsel %vm1362_vm8, %v1358_v51, %v1082_v9  ;;  %v3479_v9 = vld [vmem:[%s3599_s2] ss:$0 sm:$0xff] }
 0x166   : > { %v1066_v23 = vpop.permute.xlu0 %1065 }
 0x167   : > { %v1376_v26 = vsel %vm1362_vm8, %v1334_v11, %v1066_v23 }
 0x168   : > { %v1084_v18 = vpop.permute.xlu1 %1083 }
 0x169   : > { %v1394_v3 = vsel %vm1362_vm8, %v1361_v52, %v1084_v18 }
 0x16a   : > { %v1068_v34 = vpop.permute.xlu0 %1067 }
 0x16b   : > { %v1378_v48 = vsel %vm1362_vm8, %v1337_v17, %v1068_v34 }
 0x16c   : > { %v1120_v32 = vpop.permute.xlu1 %1119 }
 0x16d   : > { %v1425_v47 = vsel %vm1395_vm9, %v1392_v57, %v1120_v32 }
 0x16e   : > { %v1104_v19 = vpop.permute.xlu0 %1103 }
 0x16f   : > { %v1409_v28 = vsel %vm1395_vm9, %v1376_v26, %v1104_v19 }
 0x170   : > { %v1122_v44 = vpop.permute.xlu1 %1121 }
 0x171   : > { %v1427_v43 = vsel %vm1395_vm9, %v1394_v3, %v1122_v44 }
 0x172   : > { %v1106_v62 = vpop.permute.xlu0 %1105 }
 0x173   : > { %v1411_v56 = vsel %vm1395_vm9, %v1378_v48, %v1106_v62 }
 0x174   : > { %v1158_v41 = vpop.permute.xlu1 %1157 }
 0x175   : > { %v1458_v8 = vsel %vm1428_vm10, %v1425_v47, %v1158_v41 }
 0x176   : > { %v1142_v22 = vpop.permute.xlu0 %1141 }
 0x177   : > { %v1442_v61 = vsel %vm1428_vm10, %v1409_v28, %v1142_v22 }
 0x178   : > { %v1160_v24 = vpop.permute.xlu1 %1159 }
 0x179   : > { %v1460_v49 = vsel %vm1428_vm10, %v1427_v43, %v1160_v24 }
 0x17a   : > { %v1144_v10 = vpop.permute.xlu0 %1143 }
 0x17b   : > { %v1444_v54 = vsel %vm1428_vm10, %v1411_v56, %v1144_v10 }
 0x17c   : > { %v1196_v60 = vpop.permute.xlu1 %1195 }
 0x17d   : > { %v1491_v38 = vsel %vm1461_vm11, %v1458_v8, %v1196_v60 }
 0x17e   : > { %v1180_v15 = vpop.permute.xlu0 %1179 }
 0x17f   : > { %v1475_v21 = vsel %vm1461_vm11, %v1442_v61, %v1180_v15 }
 0x180   : > { %v1198_v63 = vpop.permute.xlu1 %1197 }
 0x181   : > { %v1493_v39 = vsel %vm1461_vm11, %v1460_v49, %v1198_v63 }
 0x182   : > { %v1182_v55 = vpop.permute.xlu0 %1181 }
 0x183   : > { %v1477_v20 = vsel %vm1461_vm11, %v1444_v54, %v1182_v55 }
 0x184   : > { %v1234_v7 = vpop.permute.xlu1 %1233 }
 0x185   : > { %v1524_v42 = vsel %vm1494_vm12, %v1491_v38, %v1234_v7 }
 0x186   : > { %v1218_v37 = vpop.permute.xlu0 %1217 }
 0x187   : > { %v1508_v53 = vsel %vm1494_vm12, %v1475_v21, %v1218_v37 }
 0x188   : > { %v1236_v33 = vpop.permute.xlu1 %1235 }
 0x189   : > { %v1526_v30 = vsel %vm1494_vm12, %v1493_v39, %v1236_v33 }
 0x18a   : > { %v1220_v45 = vpop.permute.xlu0 %1219 }
 0x18b   : > { %v1510_v29 = vsel %vm1494_vm12, %v1477_v20, %v1220_v45 }
 0x18c   : > { %v1272_v14 = vpop.permute.xlu1 %1271 }
 0x18d   : > { %v1557_v35 = vsel %vm1527_vm13, %v1524_v42, %v1272_v14 }
 0x18e   : > { %v1256_v12 = vpop.permute.xlu0 %1255 }
 0x18f   : > { %v1541_v25 = vsel %vm1527_vm13, %v1508_v53, %v1256_v12 }
 0x190   : > { %v1274_v1 = vpop.permute.xlu1 %1273 }
 0x191   : > { %v1559_v4 = vsel %vm1527_vm13, %v1526_v30, %v1274_v1 }
 0x192   : > { %v1258_v40 = vpop.permute.xlu0 %1257 }
 0x193   : > { %v1543_v16 = vsel %vm1527_vm13, %v1510_v29, %v1258_v40 }
 0x194   : > { %v1310_v5 = vpop.permute.xlu1 %1309 }
 0x195   : > { %v1590_v36 = vsel %vm1560_vm14, %v1557_v35, %v1310_v5 }
 0x196   : > { %2101 = vmatprep.mubr.msk.bf16.mxu1 %vm1620_vm15, %v1590_v36  ;;  %v1294_v46 = vpop.permute.xlu0 %1293 }
 0x197   : > { %v1574_v0 = vsel %vm1560_vm14, %v1541_v25, %v1294_v46 }
 0x198   : > { %v1312_v6 = vpop.permute.xlu1 %1311  ;;  %2085 = vmatprep.mubr.msk.bf16.mxu0 %vm1620_vm15, %v1574_v0 }
 0x199   : > { %v1592_v58 = vsel %vm1560_vm14, %v1559_v4, %v1312_v6 }
 0x19a   : > { %2102 = vmatmul.mubr.msk.bf16.gmra.mrb[12].mxu1 %vm1620_vm15, %v1592_v58  ;;  %v1296_v2 = vpop.permute.xlu0 %1295 }
 0x19b   : > { %v1576_v13 = vsel %vm1560_vm14, %v1543_v16, %v1296_v2 }
 0x19c   : > { %2086 = vmatmul.mubr.msk.bf16.gmra.mrb[12].mxu0 %vm1620_vm15, %v1576_v13 }
 0x1b1   : > { %v2091_v23 = vpop.f32.mrb[0].mxu1 }
 0x1b2   : > { %v1764_v18 = vadd.f32 %v2091_v23, %v3479_v9  ;;  %v1755_v34 = vpop.f32.mrb[1].mxu1 }
 0x1b3   : > { %v1756_v32 = vadd.f32 %v3479_v9, %v1755_v34  ;;  %v2092_v19 = vpop.f32.mrb[2].mxu1  ;;  %v2075_v44 = vpop.f32.mrb[0].mxu0 }
 0x1b4   : > { %1836 = vst.msk [vmem:[%s3484_s28 + $0x90] sm:$0xff] %vm1362_vm8, %v1764_v18  ;;  %v1767_v62 = vadd.f32 %v2092_v19, %v3479_v9  ;;  %v1758_v41 = vpop.f32.mrb[3].mxu1  ;;  %v1700_v22 = vadd.f32 %v2075_v44, %v3479_v9  ;;  %v1691_v24 = vpop.f32.mrb[1].mxu0 }
 0x1b5   : > { %1834 = vst.msk [vmem:[%s3484_s28 + $0x80] sm:$0xff] %vm1362_vm8, %v1756_v32  ;;  %v1759_v10 = vadd.f32 %v3479_v9, %v1758_v41  ;;  %v1692_v60 = vadd.f32 %v3479_v9, %v1691_v24  ;;  %v2076_v15 = vpop.f32.mrb[2].mxu0 }
 0x1b6   : > { %1837 = vst.msk [vmem:[%s3484_s28 + $0x98] sm:$0xff] %vm1362_vm8, %v1767_v62  ;;  %1820 = vst.msk [vmem:[%s3484_s28 + $0x10] sm:$0xff] %vm1362_vm8, %v1700_v22  ;;  %v1703_v63 = vadd.f32 %v2076_v15, %v3479_v9  ;;  %v1694_v55 = vpop.f32.mrb[3].mxu0 }
 0x1b7   : > { %1835 = vst.msk [vmem:[%s3484_s28 + $0x88] sm:$0xff] %vm1362_vm8, %v1759_v10  ;;  %1818 = vst.msk [vmem:[%s3484_s28] sm:$0xff] %vm1362_vm8, %v1692_v60  ;;  %v1695_v7 = vadd.f32 %v3479_v9, %v1694_v55 }
 0x1b8   : > { %1821 = vst.msk [vmem:[%s3484_s28 + $0x18] sm:$0xff] %vm1362_vm8, %v1703_v63 }
 0x1b9   : > { %1819 = vst.msk [vmem:[%s3484_s28 + $0x8] sm:$0xff] %vm1362_vm8, %v1695_v7 }
 0x1f1   : > { %v2095_v37 = vpop.f32.mrb[4].mxu1 }
 0x1f2   : > { %v1780_v33 = vadd.f32 %v2095_v37, %v3479_v9  ;;  %v1771_v45 = vpop.f32.mrb[5].mxu1 }
 0x1f3   : > { %v1772_v14 = vadd.f32 %v3479_v9, %v1771_v45  ;;  %v2096_v50 = vpop.f32.mrb[6].mxu1  ;;  %v2079_v51 = vpop.f32.mrb[4].mxu0 }
 0x1f4   : > { %1840 = vst.msk [vmem:[%s3484_s28 + $0xb0] sm:$0xff] %vm1362_vm8, %v1780_v33  ;;  %v1783_v57 = vadd.f32 %v2096_v50, %v3479_v9  ;;  %v1774_v12 = vpop.f32.mrb[7].mxu1  ;;  %v1716_v47 = vadd.f32 %v2079_v51, %v3479_v9  ;;  %v1707_v1 = vpop.f32.mrb[5].mxu0 }
 0x1f5   : > { %1838 = vst.msk [vmem:[%s3484_s28 + $0xa0] sm:$0xff] %vm1362_vm8, %v1772_v14  ;;  %v1775_v31 = vadd.f32 %v3479_v9, %v1774_v12  ;;  %v1708_v11 = vadd.f32 %v3479_v9, %v1707_v1  ;;  %v2080_v8 = vpop.f32.mrb[6].mxu0 }
 0x1f6   : > { %1841 = vst.msk [vmem:[%s3484_s28 + $0xb8] sm:$0xff] %vm1362_vm8, %v1783_v57  ;;  %1824 = vst.msk [vmem:[%s3484_s28 + $0x30] sm:$0xff] %vm1362_vm8, %v1716_v47  ;;  %v1719_v27 = vadd.f32 %v2080_v8, %v3479_v9  ;;  %v1710_v52 = vpop.f32.mrb[7].mxu0 }
 0x1f7   : > { %1839 = vst.msk [vmem:[%s3484_s28 + $0xa8] sm:$0xff] %vm1362_vm8, %v1775_v31  ;;  %1822 = vst.msk [vmem:[%s3484_s28 + $0x20] sm:$0xff] %vm1362_vm8, %v1708_v11  ;;  %v1711_v26 = vadd.f32 %v3479_v9, %v1710_v52 }
 0x1f8   : > { %1825 = vst.msk [vmem:[%s3484_s28 + $0x38] sm:$0xff] %vm1362_vm8, %v1719_v27 }
 0x1f9   : > { %1823 = vst.msk [vmem:[%s3484_s28 + $0x28] sm:$0xff] %vm1362_vm8, %v1711_v26 }
 0x231   : > { %v2099_v38 = vpop.f32.mrb[8].mxu1 }
 0x232   : > { %v1796_v3 = vadd.f32 %v2099_v38, %v3479_v9  ;;  %v1787_v28 = vpop.f32.mrb[9].mxu1 }
 0x233   : > { %v1788_v42 = vadd.f32 %v3479_v9, %v1787_v28  ;;  %v2100_v40 = vpop.f32.mrb[10].mxu1  ;;  %v2083_v43 = vpop.f32.mrb[8].mxu0 }
 0x234   : > { %1844 = vst.msk [vmem:[%s3484_s28 + $0xd0] sm:$0xff] %vm1362_vm8, %v1796_v3  ;;  %v1799_v61 = vadd.f32 %v2100_v40, %v3479_v9  ;;  %v1790_v35 = vpop.f32.mrb[11].mxu1  ;;  %v1732_v5 = vadd.f32 %v2083_v43, %v3479_v9  ;;  %v1723_v59 = vpop.f32.mrb[9].mxu0 }
 0x235   : > { %1842 = vst.msk [vmem:[%s3484_s28 + $0xc0] sm:$0xff] %vm1362_vm8, %v1788_v42  ;;  %v1791_v17 = vadd.f32 %v3479_v9, %v1790_v35  ;;  %v1724_v49 = vadd.f32 %v3479_v9, %v1723_v59  ;;  %v2084_v21 = vpop.f32.mrb[10].mxu0 }
 0x236   : > { %1845 = vst.msk [vmem:[%s3484_s28 + $0xd8] sm:$0xff] %vm1362_vm8, %v1799_v61  ;;  %1828 = vst.msk [vmem:[%s3484_s28 + $0x50] sm:$0xff] %vm1362_vm8, %v1732_v5  ;;  %v1735_v36 = vadd.f32 %v2084_v21, %v3479_v9  ;;  %v1726_v48 = vpop.f32.mrb[11].mxu0 }
 0x237   : > { %1843 = vst.msk [vmem:[%s3484_s28 + $0xc8] sm:$0xff] %vm1362_vm8, %v1791_v17  ;;  %1826 = vst.msk [vmem:[%s3484_s28 + $0x40] sm:$0xff] %vm1362_vm8, %v1724_v49  ;;  %v1727_v39 = vadd.f32 %v3479_v9, %v1726_v48 }
 0x238   : > { %1829 = vst.msk [vmem:[%s3484_s28 + $0x58] sm:$0xff] %vm1362_vm8, %v1735_v36 }
 0x239   : > { %1827 = vst.msk [vmem:[%s3484_s28 + $0x48] sm:$0xff] %vm1362_vm8, %v1727_v39 }
 0x26d   : > { %v2103_v53 = vpop.f32.mrb[12].mxu1 }
 0x26e   : > { %v1812_v56 = vadd.f32 %v2103_v53, %v3479_v9  ;;  %v1803_v30 = vpop.f32.mrb[13].mxu1 }
 0x26f   : > { %v1804_v25 = vadd.f32 %v3479_v9, %v1803_v30  ;;  %v2104_v46 = vpop.f32.mrb[14].mxu1  ;;  %v2087_v54 = vpop.f32.mrb[12].mxu0 }
 0x270   : > { %1848 = vst.msk [vmem:[%s3484_s28 + $0xf0] sm:$0xff] %vm1362_vm8, %v1812_v56  ;;  %v1815_v4 = vadd.f32 %v2104_v46, %v3479_v9  ;;  %v1806_v0 = vpop.f32.mrb[15].mxu1  ;;  %v1748_v6 = vadd.f32 %v2087_v54, %v3479_v9  ;;  %v1739_v20 = vpop.f32.mrb[13].mxu0 }
 0x271   : > { %1846 = vst.msk [vmem:[%s3484_s28 + $0xe0] sm:$0xff] %vm1362_vm8, %v1804_v25  ;;  %v1807_v58 = vadd.f32 %v3479_v9, %v1806_v0  ;;  %v1740_v29 = vadd.f32 %v3479_v9, %v1739_v20  ;;  %v2088_v16 = vpop.f32.mrb[14].mxu0 }
 0x272   : > { %1849 = vst.msk [vmem:[%s3484_s28 + $0xf8] sm:$0xff] %vm1362_vm8, %v1815_v4  ;;  %1832 = vst.msk [vmem:[%s3484_s28 + $0x70] sm:$0xff] %vm1362_vm8, %v1748_v6  ;;  %v1751_v2 = vadd.f32 %v2088_v16, %v3479_v9  ;;  %v1742_v13 = vpop.f32.mrb[15].mxu0 }
 0x273   : > { %1847 = vst.msk [vmem:[%s3484_s28 + $0xe8] sm:$0xff] %vm1362_vm8, %v1807_v58  ;;  %1830 = vst.msk [vmem:[%s3484_s28 + $0x60] sm:$0xff] %vm1362_vm8, %v1740_v29  ;;  %v1743_v23 = vadd.f32 %v3479_v9, %v1742_v13 }
 0x274   : > { %1833 = vst.msk [vmem:[%s3484_s28 + $0x78] sm:$0xff] %vm1362_vm8, %v1751_v2 }
 0x275   : > { %1831 = vst.msk [vmem:[%s3484_s28 + $0x68] sm:$0xff] %vm1362_vm8, %v1743_v23 }
 0x276 PF: > { %s13_s16 = sadd.s32 1, %s2231_s16   ;;  %s3658_s12 = smov %s2223_s14 }
 0x277   : > { %p10_p7 = scmp.ge.s32.totalorder %s13_s16, 10   ;;  %s3659_s13 = smov %s2227_s15 }
 0x278   : > { %s3660_s14 = smov %s3663_s17  ;;  %s3661_s15 = smov %s3667_s18 }
 0x279   :  { %12 = sbr.rel (!%p10_p7) target bundleno = 3 (0x3), region = 63 }

</bundles_post_ra>
